<compile_context>
chip_gen: v5e
topology: v5e:2x2
jax: 0.10.0
libtpu: 0.0.40
codegen_flags: <defaults>
</compile_context>

<pallas_src>
import math

import numpy as np

import jax
import jax.numpy as jnp
from jax.experimental import pallas as pl
from jax.experimental.pallas import tpu as pltpu


# ----------------------------------------------------------------------------
# In-kernel helpers
# ----------------------------------------------------------------------------
def _parity_select(rows, cols, parity):
    """(rows, cols) f32 selection matrix S with S[r, 2*r + parity] = 1."""
    r = jax.lax.broadcasted_iota(jnp.int32, (rows, cols), 0)
    c = jax.lax.broadcasted_iota(jnp.int32, (rows, cols), 1)
    return (c == 2 * r + parity).astype(jnp.float32)


def _pool2x2_bias_relu(y, bias_row):
    """relu(maxpool2x2(conv rows) + bias).

    y: (Ho, 2*half) pre-bias conv output rows whose columns are ordered
       (w-parity, pooled-w, channel)  ->  W-pool = max of the two lane halves,
       H-pool = max of two 0/1 selection matmuls (even/odd rows).
    Returns (Ho//2, half).
    """
    ho, n = y.shape
    hp, half = ho // 2, n // 2
    s_even = _parity_select(hp, ho, 0)
    s_odd = _parity_select(hp, ho, 1)
    m = jnp.maximum(
        jnp.dot(s_even, y, preferred_element_type=jnp.float32),
        jnp.dot(s_odd, y, preferred_element_type=jnp.float32))
    m = jnp.maximum(m[:, :half], m[:, half:])
    return jnp.maximum(m + bias_row, 0.0)


# ----------------------------------------------------------------------------
# Fused whole-network kernel: one image per grid step
# ----------------------------------------------------------------------------
def _simple_cnn_kernel(x_ref, w1m_ref, b1_ref, w2m_ref, b2_ref,
                       w1fc_ref, b1fc_ref, w2fc_ref, b2fc_ref,
                       w3fc_ref, b3fc_ref, out_ref):
    # Static (trace-time) sizes derived from the ref shapes.
    _, cin, h_in, _w_in = x_ref.shape
    k1 = w1m_ref.shape[0] // cin
    n1 = w1m_ref.shape[2]
    ho1 = h_in - k1 + 1                                  # conv1 output rows (28)

    # ---- conv1: per-(ci, kh) row-matmuls straight off the NCHW input block --
    y1 = jnp.zeros((ho1, n1), jnp.float32)
    for ci in range(cin):
        plane = x_ref[0, ci]                             # (32, 32) image plane in VMEM
        for kh in range(k1):
            y1 = y1 + jnp.dot(plane[kh:kh + ho1, :], w1m_ref[ci * k1 + kh],
                              preferred_element_type=jnp.float32)
    a1 = _pool2x2_bias_relu(y1, b1_ref[...])             # (14, 14*6)

    # ---- conv2: input rows already (w, channel)-flattened in lanes ----------
    k2, _, n2 = w2m_ref.shape
    hp1 = a1.shape[0]
    ho2 = hp1 - k2 + 1                                   # 10
    y2 = jnp.zeros((ho2, n2), jnp.float32)
    for kh in range(k2):
        y2 = y2 + jnp.dot(a1[kh:kh + ho2, :], w2m_ref[kh],
                          preferred_element_type=jnp.float32)
    a2 = _pool2x2_bias_relu(y2, b2_ref[...])             # (5, 5*16)

    # ---- MLP: torch's NCHW flatten is absorbed into fc1's per-row chunks ----
    hp2 = a2.shape[0]
    d1 = w1fc_ref.shape[2]
    h1 = jnp.zeros((1, d1), jnp.float32)
    for r in range(hp2):
        h1 = h1 + jnp.dot(a2[r:r + 1, :], w1fc_ref[r],
                          preferred_element_type=jnp.float32)
    h1 = jnp.maximum(h1 + b1fc_ref[...], 0.0)
    h2 = jnp.maximum(jnp.dot(h1, w2fc_ref[...],
                             preferred_element_type=jnp.float32) + b2fc_ref[...], 0.0)
    logits = jnp.dot(h2, w3fc_ref[...],
                     preferred_element_type=jnp.float32) + b3fc_ref[...]
    out_ref[0] = logits.astype(out_ref.dtype)


_WEIGHT_KEYS = ("w1m", "b1r", "w2m", "b2r",
                "w1fc", "b1fc", "w2fc", "b2fc", "w3fc", "b3fc")


def _const_spec(a):
    nd = a.ndim
    return pl.BlockSpec(a.shape, lambda i, _nd=nd: (0,) * _nd)


def simple_cnn_forward(params, x):
    """x: (B, 3, H, W) NCHW float32 -> (B, output_dim) logits."""
    b, cin, h_in, w_in = x.shape
    n_out = params["b3fc"].shape[-1]

    # NOTE: one image per grid step keeps every in-kernel array 2-D (robust
    # lowering); per-step DMA is ~12 KB and weights are fetched once, so the
    # kernel is compute/launch-overhead bound rather than HBM bound.
    out = pl.pallas_call(
        _simple_cnn_kernel,
        out_shape=jax.ShapeDtypeStruct((b, 1, n_out), x.dtype),
        grid=(b,),
        in_specs=[pl.BlockSpec((1, cin, h_in, w_in), lambda i: (i, 0, 0, 0))]
                 + [_const_spec(params[k]) for k in _WEIGHT_KEYS],
        out_specs=pl.BlockSpec((1, 1, n_out), lambda i: (i, 0, 0)),
        compiler_params=pltpu.CompilerParams(
            dimension_semantics=("parallel",)),
    )(x, *(params[k] for k in _WEIGHT_KEYS))
    return out.reshape(b, n_out)


# ----------------------------------------------------------------------------
# Parameters (torch layout) + one-time layout preparation
# ----------------------------------------------------------------------------
def init_params(key, input_dim=400, hidden_dims=(120, 84), output_dim=10):
    """Parameters in the PyTorch SimpleCNN layout (Conv2d OIHW, Linear (out,in))."""
    ks = jax.random.split(key, 10)

    def u(k, shape, fan_in):
        bound = 1.0 / math.sqrt(fan_in)
        return jax.random.uniform(k, shape, jnp.float32, -bound, bound)

    return dict(
        conv1_w=u(ks[0], (6, 3, 5, 5), 3 * 25),
        conv1_b=u(ks[1], (6,), 3 * 25),
        conv2_w=u(ks[2], (16, 6, 5, 5), 6 * 25),
        conv2_b=u(ks[3], (16,), 6 * 25),
        fc1_w=u(ks[4], (hidden_dims[0], input_dim), input_dim),
        fc1_b=u(ks[5], (hidden_dims[0],), input_dim),
        fc2_w=u(ks[6], (hidden_dims[1], hidden_dims[0]), hidden_dims[0]),
        fc2_b=u(ks[7], (hidden_dims[1],), hidden_dims[0]),
        fc3_w=u(ks[8], (output_dim, hidden_dims[1]), hidden_dims[1]),
        fc3_b=u(ks[9], (output_dim,), hidden_dims[1]),
    )


def _row_conv_mats(w, w_in):
    """Block-Toeplitz row-matmul matrices for a VALID conv, with output columns
    ordered (w-parity, pooled-w, out-channel) so a 2x2 W-pool is a max of the
    two contiguous lane halves.

    w: (cout, cin, k, k) torch OIHW weight (numpy).
    Returns mats (cin, k, w_in, 2*wp*cout) with
      mats[ci, kh, iw, px*wp*cout + pw*cout + co] = w[co, ci, kh, iw-(2*pw+px)]
    for 0 <= iw-(2*pw+px) < k, zero elsewhere.
    """
    cout, cin, k, _ = w.shape
    wo = w_in - k + 1
    wp = wo // 2
    mats = np.zeros((cin, k, w_in, 2 * wp * cout), np.float32)
    w_t = np.transpose(w, (1, 2, 3, 0))                  # (cin, kh, kw, cout)
    for ow in range(2 * wp):                             # floor pool: drop odd tail
        pw, px = ow // 2, ow % 2
        col = px * wp * cout + pw * cout
        for kw in range(k):
            mats[:, :, ow + kw, col:col + cout] = w_t[:, :, kw, :]
    return mats


def _pad_axis(a, axis, new_size):
    pad = [(0, 0)] * a.ndim
    pad[axis] = (0, new_size - a.shape[axis])
    return np.pad(a, pad)


def prepare_params(p, image_hw=(32, 32), lane_pad=128):
    """One-time layout work (outside the forward pass): conv weights -> per-tap
    row-matmul matrices with pool-friendly column order, biases pre-tiled to
    the pooled row layout, fc1 rows permuted to absorb the NCHW flatten and
    split per pooled row, fc widths zero-padded to a lane-dense multiple of
    `lane_pad` (exact results: padding is all zeros)."""
    np_p = {k: np.asarray(v, np.float32) for k, v in p.items()}
    h_in, w_in = image_hw

    w1, b1 = np_p["conv1_w"], np_p["conv1_b"]
    w2, b2 = np_p["conv2_w"], np_p["conv2_b"]
    cout1, cin1, k1, _ = w1.shape
    cout2, cin2, k2, _ = w2.shape
    assert cin2 == cout1

    # conv1: per-(ci, kh) matrices applied to raw NCHW input rows.
    wp1 = (w_in - k1 + 1) // 2
    hp1 = (h_in - k1 + 1) // 2
    m1 = _row_conv_mats(w1, w_in).reshape(cin1 * k1, w_in, 2 * wp1 * cout1)

    # conv2: per-kh matrices; its input rows have lanes flattened (w, channel),
    # so interleave (iw, ci) in the contraction dim.
    wp2 = (wp1 - k2 + 1) // 2
    hp2 = (hp1 - k2 + 1) // 2
    m2 = _row_conv_mats(w2, wp1)                         # (cin2, k2, wp1, 2*wp2*cout2)
    m2 = np.transpose(m2, (1, 2, 0, 3)).reshape(k2, wp1 * cin2, 2 * wp2 * cout2)

    # fc1: absorb torch's x.view(-1, 400) (NCHW order): rows -> (h, w, c),
    # split per pooled row h, output width zero-padded for lane density.
    fc1_w, fc1_b = np_p["fc1_w"], np_p["fc1_b"]
    d_h1, d_in = fc1_w.shape
    assert d_in == cout2 * hp2 * wp2, "input_dim inconsistent with image_hw"
    d1p = -(-d_h1 // lane_pad) * lane_pad
    w1fc = fc1_w.reshape(d_h1, cout2, hp2, wp2)          # (o, c, h, w)
    w1fc = np.transpose(w1fc, (2, 3, 1, 0)).reshape(hp2, wp2 * cout2, d_h1)
    w1fc = _pad_axis(w1fc, 2, d1p)

    fc2_w, fc2_b = np_p["fc2_w"], np_p["fc2_b"]
    d_h2 = fc2_w.shape[0]
    d2p = -(-d_h2 // lane_pad) * lane_pad
    w2fc = _pad_axis(_pad_axis(fc2_w.T, 0, d1p), 1, d2p)

    fc3_w, fc3_b = np_p["fc3_w"], np_p["fc3_b"]
    w3fc = _pad_axis(fc3_w.T, 0, d2p)

    prep = dict(
        w1m=m1,
        b1r=np.tile(b1, wp1).reshape(1, -1),
        w2m=m2,
        b2r=np.tile(b2, wp2).reshape(1, -1),
        w1fc=w1fc,
        b1fc=_pad_axis(fc1_b, 0, d1p).reshape(1, -1),
        w2fc=w2fc,
        b2fc=_pad_axis(fc2_b, 0, d2p).reshape(1, -1),
        w3fc=w3fc,
        b3fc=fc3_b.reshape(1, -1),
    )
    return {k: jnp.asarray(v) for k, v in prep.items()}


# ----------------------------------------------------------------------------
# Plain-XLA reference (matches torch SimpleCNN.forward) for a self-check
# ----------------------------------------------------------------------------
def reference_forward(raw, x):
    def conv(v, w, bias):
        v = jax.lax.conv_general_dilated(
            v, w, window_strides=(1, 1), padding="VALID",
            dimension_numbers=("NCHW", "OIHW", "NCHW"),
            precision=jax.lax.Precision.HIGHEST)
        return jax.nn.relu(v + bias[None, :, None, None])

    def pool(v):
        return jax.lax.reduce_window(v, -jnp.inf, jax.lax.max,
                                     (1, 1, 2, 2), (1, 1, 2, 2), "VALID")

    v = pool(conv(x, raw["conv1_w"], raw["conv1_b"]))
    v = pool(conv(v, raw["conv2_w"], raw["conv2_b"]))
    v = v.reshape(v.shape[0], -1)                        # torch x.view(-1, 400)
    v = jax.nn.relu(v @ raw["fc1_w"].T + raw["fc1_b"])
    v = jax.nn.relu(v @ raw["fc2_w"].T + raw["fc2_b"])
    return v @ raw["fc3_w"].T + raw["fc3_b"]


if __name__ == "__main__":
    key = jax.random.PRNGKey(0)
    k_param, k_x = jax.random.split(key)

    # SimpleCNN(input_dim=400, hidden_dims=[120, 84], output_dim=10):
    # 32x32 RGB input so the conv/pool stack flattens to 16*5*5 = 400.
    raw_params = init_params(k_param, input_dim=400, hidden_dims=(120, 84),
                             output_dim=10)
    params = prepare_params(raw_params, image_hw=(32, 32))   # one-time layout prep
    x = jax.random.normal(k_x, (2, 3, 32, 32), dtype=jnp.float32)

    out = jax.jit(simple_cnn_forward)(params, x)
    out = jax.block_until_ready(out)
    assert out.shape == (2, 10), out.shape

    # Numerical self-check vs. a plain-XLA reference (loose tolerance: only the
    # MXU accumulation order differs).
    ref = np.asarray(reference_forward(raw_params, x))
    got = np.asarray(out)
    assert np.allclose(got, ref, rtol=5e-2, atol=5e-2), float(
        np.max(np.abs(got - ref)))

    print("KERNEL_OK")
</pallas_src>

<mosaic_0001>
module attributes {stable_mosaic.version = 11 : i64} {
  func.func @_simple_cnn_kernel(%arg0: i32, %arg1: memref<1x3x32x32xf32, #tpu.memory_space<vmem>>, %arg2: memref<15x32x168xf32, #tpu.memory_space<vmem>>, %arg3: memref<1x84xf32, #tpu.memory_space<vmem>>, %arg4: memref<5x84x160xf32, #tpu.memory_space<vmem>>, %arg5: memref<1x80xf32, #tpu.memory_space<vmem>>, %arg6: memref<5x80x128xf32, #tpu.memory_space<vmem>>, %arg7: memref<1x128xf32, #tpu.memory_space<vmem>>, %arg8: memref<128x128xf32, #tpu.memory_space<vmem>>, %arg9: memref<1x128xf32, #tpu.memory_space<vmem>>, %arg10: memref<128x10xf32, #tpu.memory_space<vmem>>, %arg11: memref<1x10xf32, #tpu.memory_space<vmem>>, %arg12: memref<1x1x10xf32, #tpu.memory_space<vmem>>) attributes {dimension_semantics = [#tpu.dimension_semantics<parallel>], iteration_bounds = array<i64: 2>, scalar_prefetch = 0 : i64, scratch_operands = 0 : i64, tpu.core_type = #tpu.core_type<tc>, window_params = [{transform_indices = @transform_0, window_bounds = array<i64: 1, 3, 32, 32>}, {pipeline_mode = #tpu.pipeline_mode<synchronous>, transform_indices = @transform_1, window_bounds = array<i64: 15, 32, 168>}, {pipeline_mode = #tpu.pipeline_mode<synchronous>, transform_indices = @transform_2, window_bounds = array<i64: 1, 84>}, {pipeline_mode = #tpu.pipeline_mode<synchronous>, transform_indices = @transform_3, window_bounds = array<i64: 5, 84, 160>}, {pipeline_mode = #tpu.pipeline_mode<synchronous>, transform_indices = @transform_4, window_bounds = array<i64: 1, 80>}, {pipeline_mode = #tpu.pipeline_mode<synchronous>, transform_indices = @transform_5, window_bounds = array<i64: 5, 80, 128>}, {pipeline_mode = #tpu.pipeline_mode<synchronous>, transform_indices = @transform_6, window_bounds = array<i64: 1, 128>}, {pipeline_mode = #tpu.pipeline_mode<synchronous>, transform_indices = @transform_7, window_bounds = array<i64: 128, 128>}, {pipeline_mode = #tpu.pipeline_mode<synchronous>, transform_indices = @transform_8, window_bounds = array<i64: 1, 128>}, {pipeline_mode = #tpu.pipeline_mode<synchronous>, transform_indices = @transform_9, window_bounds = array<i64: 128, 10>}, {pipeline_mode = #tpu.pipeline_mode<synchronous>, transform_indices = @transform_10, window_bounds = array<i64: 1, 10>}, {transform_indices = @transform_11, window_bounds = array<i64: 1, 1, 10>}]} {
    %cst = arith.constant 0.000000e+00 : f32
    %0 = vector.broadcast %cst : f32 to vector<28x168xf32>
    %c0 = arith.constant 0 : index
    %c0_0 = arith.constant 0 : index
    %c0_1 = arith.constant 0 : index
    %c0_2 = arith.constant 0 : index
    %1 = vector.load %arg1[%c0, %c0_0, %c0_1, %c0_2] : memref<1x3x32x32xf32, #tpu.memory_space<vmem>>, vector<1x1x32x32xf32>
    %2 = vector.shape_cast %1 : vector<1x1x32x32xf32> to vector<32x32xf32>
    %3 = vector.extract_strided_slice %2 {offsets = [0, 0], sizes = [28, 32], strides = [1, 1]} : vector<32x32xf32> to vector<28x32xf32>
    %c0_3 = arith.constant 0 : index
    %c0_4 = arith.constant 0 : index
    %c0_5 = arith.constant 0 : index
    %4 = vector.load %arg2[%c0_3, %c0_4, %c0_5] : memref<15x32x168xf32, #tpu.memory_space<vmem>>, vector<1x32x168xf32>
    %5 = vector.shape_cast %4 : vector<1x32x168xf32> to vector<32x168xf32>
    %cst_6 = arith.constant dense<0.000000e+00> : vector<28x168xf32>
    %6 = tpu.matmul %3, %5, %cst_6 {dimension_numbers = #tpu.dot_dimension_numbers<[1], [0], [0], [1], [0, 0, 1, 1], [], []>} : vector<28x32xf32>, vector<32x168xf32>, vector<28x168xf32> -> vector<28x168xf32>
    %7 = arith.addf %0, %6 : vector<28x168xf32>
    %8 = vector.extract_strided_slice %2 {offsets = [1, 0], sizes = [28, 32], strides = [1, 1]} : vector<32x32xf32> to vector<28x32xf32>
    %c1 = arith.constant 1 : index
    %c0_7 = arith.constant 0 : index
    %c0_8 = arith.constant 0 : index
    %9 = vector.load %arg2[%c1, %c0_7, %c0_8] : memref<15x32x168xf32, #tpu.memory_space<vmem>>, vector<1x32x168xf32>
    %10 = vector.shape_cast %9 : vector<1x32x168xf32> to vector<32x168xf32>
    %cst_9 = arith.constant dense<0.000000e+00> : vector<28x168xf32>
    %11 = tpu.matmul %8, %10, %cst_9 {dimension_numbers = #tpu.dot_dimension_numbers<[1], [0], [0], [1], [0, 0, 1, 1], [], []>} : vector<28x32xf32>, vector<32x168xf32>, vector<28x168xf32> -> vector<28x168xf32>
    %12 = arith.addf %7, %11 : vector<28x168xf32>
    %13 = vector.extract_strided_slice %2 {offsets = [2, 0], sizes = [28, 32], strides = [1, 1]} : vector<32x32xf32> to vector<28x32xf32>
    %c2 = arith.constant 2 : index
    %c0_10 = arith.constant 0 : index
    %c0_11 = arith.constant 0 : index
    %14 = vector.load %arg2[%c2, %c0_10, %c0_11] : memref<15x32x168xf32, #tpu.memory_space<vmem>>, vector<1x32x168xf32>
    %15 = vector.shape_cast %14 : vector<1x32x168xf32> to vector<32x168xf32>
    %cst_12 = arith.constant dense<0.000000e+00> : vector<28x168xf32>
    %16 = tpu.matmul %13, %15, %cst_12 {dimension_numbers = #tpu.dot_dimension_numbers<[1], [0], [0], [1], [0, 0, 1, 1], [], []>} : vector<28x32xf32>, vector<32x168xf32>, vector<28x168xf32> -> vector<28x168xf32>
    %17 = arith.addf %12, %16 : vector<28x168xf32>
    %18 = vector.extract_strided_slice %2 {offsets = [3, 0], sizes = [28, 32], strides = [1, 1]} : vector<32x32xf32> to vector<28x32xf32>
    %c3 = arith.constant 3 : index
    %c0_13 = arith.constant 0 : index
    %c0_14 = arith.constant 0 : index
    %19 = vector.load %arg2[%c3, %c0_13, %c0_14] : memref<15x32x168xf32, #tpu.memory_space<vmem>>, vector<1x32x168xf32>
    %20 = vector.shape_cast %19 : vector<1x32x168xf32> to vector<32x168xf32>
    %cst_15 = arith.constant dense<0.000000e+00> : vector<28x168xf32>
    %21 = tpu.matmul %18, %20, %cst_15 {dimension_numbers = #tpu.dot_dimension_numbers<[1], [0], [0], [1], [0, 0, 1, 1], [], []>} : vector<28x32xf32>, vector<32x168xf32>, vector<28x168xf32> -> vector<28x168xf32>
    %22 = arith.addf %17, %21 : vector<28x168xf32>
    %23 = vector.extract_strided_slice %2 {offsets = [4, 0], sizes = [28, 32], strides = [1, 1]} : vector<32x32xf32> to vector<28x32xf32>
    %c4 = arith.constant 4 : index
    %c0_16 = arith.constant 0 : index
    %c0_17 = arith.constant 0 : index
    %24 = vector.load %arg2[%c4, %c0_16, %c0_17] : memref<15x32x168xf32, #tpu.memory_space<vmem>>, vector<1x32x168xf32>
    %25 = vector.shape_cast %24 : vector<1x32x168xf32> to vector<32x168xf32>
    %cst_18 = arith.constant dense<0.000000e+00> : vector<28x168xf32>
    %26 = tpu.matmul %23, %25, %cst_18 {dimension_numbers = #tpu.dot_dimension_numbers<[1], [0], [0], [1], [0, 0, 1, 1], [], []>} : vector<28x32xf32>, vector<32x168xf32>, vector<28x168xf32> -> vector<28x168xf32>
    %27 = arith.addf %22, %26 : vector<28x168xf32>
    %c0_19 = arith.constant 0 : index
    %c1_20 = arith.constant 1 : index
    %c0_21 = arith.constant 0 : index
    %c0_22 = arith.constant 0 : index
    %28 = vector.load %arg1[%c0_19, %c1_20, %c0_21, %c0_22] : memref<1x3x32x32xf32, #tpu.memory_space<vmem>>, vector<1x1x32x32xf32>
    %29 = vector.shape_cast %28 : vector<1x1x32x32xf32> to vector<32x32xf32>
    %30 = vector.extract_strided_slice %29 {offsets = [0, 0], sizes = [28, 32], strides = [1, 1]} : vector<32x32xf32> to vector<28x32xf32>
    %c5 = arith.constant 5 : index
    %c0_23 = arith.constant 0 : index
    %c0_24 = arith.constant 0 : index
    %31 = vector.load %arg2[%c5, %c0_23, %c0_24] : memref<15x32x168xf32, #tpu.memory_space<vmem>>, vector<1x32x168xf32>
    %32 = vector.shape_cast %31 : vector<1x32x168xf32> to vector<32x168xf32>
    %cst_25 = arith.constant dense<0.000000e+00> : vector<28x168xf32>
    %33 = tpu.matmul %30, %32, %cst_25 {dimension_numbers = #tpu.dot_dimension_numbers<[1], [0], [0], [1], [0, 0, 1, 1], [], []>} : vector<28x32xf32>, vector<32x168xf32>, vector<28x168xf32> -> vector<28x168xf32>
    %34 = arith.addf %27, %33 : vector<28x168xf32>
    %35 = vector.extract_strided_slice %29 {offsets = [1, 0], sizes = [28, 32], strides = [1, 1]} : vector<32x32xf32> to vector<28x32xf32>
    %c6 = arith.constant 6 : index
    %c0_26 = arith.constant 0 : index
    %c0_27 = arith.constant 0 : index
    %36 = vector.load %arg2[%c6, %c0_26, %c0_27] : memref<15x32x168xf32, #tpu.memory_space<vmem>>, vector<1x32x168xf32>
    %37 = vector.shape_cast %36 : vector<1x32x168xf32> to vector<32x168xf32>
    %cst_28 = arith.constant dense<0.000000e+00> : vector<28x168xf32>
    %38 = tpu.matmul %35, %37, %cst_28 {dimension_numbers = #tpu.dot_dimension_numbers<[1], [0], [0], [1], [0, 0, 1, 1], [], []>} : vector<28x32xf32>, vector<32x168xf32>, vector<28x168xf32> -> vector<28x168xf32>
    %39 = arith.addf %34, %38 : vector<28x168xf32>
    %40 = vector.extract_strided_slice %29 {offsets = [2, 0], sizes = [28, 32], strides = [1, 1]} : vector<32x32xf32> to vector<28x32xf32>
    %c7 = arith.constant 7 : index
    %c0_29 = arith.constant 0 : index
    %c0_30 = arith.constant 0 : index
    %41 = vector.load %arg2[%c7, %c0_29, %c0_30] : memref<15x32x168xf32, #tpu.memory_space<vmem>>, vector<1x32x168xf32>
    %42 = vector.shape_cast %41 : vector<1x32x168xf32> to vector<32x168xf32>
    %cst_31 = arith.constant dense<0.000000e+00> : vector<28x168xf32>
    %43 = tpu.matmul %40, %42, %cst_31 {dimension_numbers = #tpu.dot_dimension_numbers<[1], [0], [0], [1], [0, 0, 1, 1], [], []>} : vector<28x32xf32>, vector<32x168xf32>, vector<28x168xf32> -> vector<28x168xf32>
    %44 = arith.addf %39, %43 : vector<28x168xf32>
    %45 = vector.extract_strided_slice %29 {offsets = [3, 0], sizes = [28, 32], strides = [1, 1]} : vector<32x32xf32> to vector<28x32xf32>
    %c8 = arith.constant 8 : index
    %c0_32 = arith.constant 0 : index
    %c0_33 = arith.constant 0 : index
    %46 = vector.load %arg2[%c8, %c0_32, %c0_33] : memref<15x32x168xf32, #tpu.memory_space<vmem>>, vector<1x32x168xf32>
    %47 = vector.shape_cast %46 : vector<1x32x168xf32> to vector<32x168xf32>
    %cst_34 = arith.constant dense<0.000000e+00> : vector<28x168xf32>
    %48 = tpu.matmul %45, %47, %cst_34 {dimension_numbers = #tpu.dot_dimension_numbers<[1], [0], [0], [1], [0, 0, 1, 1], [], []>} : vector<28x32xf32>, vector<32x168xf32>, vector<28x168xf32> -> vector<28x168xf32>
    %49 = arith.addf %44, %48 : vector<28x168xf32>
    %50 = vector.extract_strided_slice %29 {offsets = [4, 0], sizes = [28, 32], strides = [1, 1]} : vector<32x32xf32> to vector<28x32xf32>
    %c9 = arith.constant 9 : index
    %c0_35 = arith.constant 0 : index
    %c0_36 = arith.constant 0 : index
    %51 = vector.load %arg2[%c9, %c0_35, %c0_36] : memref<15x32x168xf32, #tpu.memory_space<vmem>>, vector<1x32x168xf32>
    %52 = vector.shape_cast %51 : vector<1x32x168xf32> to vector<32x168xf32>
    %cst_37 = arith.constant dense<0.000000e+00> : vector<28x168xf32>
    %53 = tpu.matmul %50, %52, %cst_37 {dimension_numbers = #tpu.dot_dimension_numbers<[1], [0], [0], [1], [0, 0, 1, 1], [], []>} : vector<28x32xf32>, vector<32x168xf32>, vector<28x168xf32> -> vector<28x168xf32>
    %54 = arith.addf %49, %53 : vector<28x168xf32>
    %c0_38 = arith.constant 0 : index
    %c2_39 = arith.constant 2 : index
    %c0_40 = arith.constant 0 : index
    %c0_41 = arith.constant 0 : index
    %55 = vector.load %arg1[%c0_38, %c2_39, %c0_40, %c0_41] : memref<1x3x32x32xf32, #tpu.memory_space<vmem>>, vector<1x1x32x32xf32>
    %56 = vector.shape_cast %55 : vector<1x1x32x32xf32> to vector<32x32xf32>
    %57 = vector.extract_strided_slice %56 {offsets = [0, 0], sizes = [28, 32], strides = [1, 1]} : vector<32x32xf32> to vector<28x32xf32>
    %c10 = arith.constant 10 : index
    %c0_42 = arith.constant 0 : index
    %c0_43 = arith.constant 0 : index
    %58 = vector.load %arg2[%c10, %c0_42, %c0_43] : memref<15x32x168xf32, #tpu.memory_space<vmem>>, vector<1x32x168xf32>
    %59 = vector.shape_cast %58 : vector<1x32x168xf32> to vector<32x168xf32>
    %cst_44 = arith.constant dense<0.000000e+00> : vector<28x168xf32>
    %60 = tpu.matmul %57, %59, %cst_44 {dimension_numbers = #tpu.dot_dimension_numbers<[1], [0], [0], [1], [0, 0, 1, 1], [], []>} : vector<28x32xf32>, vector<32x168xf32>, vector<28x168xf32> -> vector<28x168xf32>
    %61 = arith.addf %54, %60 : vector<28x168xf32>
    %62 = vector.extract_strided_slice %56 {offsets = [1, 0], sizes = [28, 32], strides = [1, 1]} : vector<32x32xf32> to vector<28x32xf32>
    %c11 = arith.constant 11 : index
    %c0_45 = arith.constant 0 : index
    %c0_46 = arith.constant 0 : index
    %63 = vector.load %arg2[%c11, %c0_45, %c0_46] : memref<15x32x168xf32, #tpu.memory_space<vmem>>, vector<1x32x168xf32>
    %64 = vector.shape_cast %63 : vector<1x32x168xf32> to vector<32x168xf32>
    %cst_47 = arith.constant dense<0.000000e+00> : vector<28x168xf32>
    %65 = tpu.matmul %62, %64, %cst_47 {dimension_numbers = #tpu.dot_dimension_numbers<[1], [0], [0], [1], [0, 0, 1, 1], [], []>} : vector<28x32xf32>, vector<32x168xf32>, vector<28x168xf32> -> vector<28x168xf32>
    %66 = arith.addf %61, %65 : vector<28x168xf32>
    %67 = vector.extract_strided_slice %56 {offsets = [2, 0], sizes = [28, 32], strides = [1, 1]} : vector<32x32xf32> to vector<28x32xf32>
    %c12 = arith.constant 12 : index
    %c0_48 = arith.constant 0 : index
    %c0_49 = arith.constant 0 : index
    %68 = vector.load %arg2[%c12, %c0_48, %c0_49] : memref<15x32x168xf32, #tpu.memory_space<vmem>>, vector<1x32x168xf32>
    %69 = vector.shape_cast %68 : vector<1x32x168xf32> to vector<32x168xf32>
    %cst_50 = arith.constant dense<0.000000e+00> : vector<28x168xf32>
    %70 = tpu.matmul %67, %69, %cst_50 {dimension_numbers = #tpu.dot_dimension_numbers<[1], [0], [0], [1], [0, 0, 1, 1], [], []>} : vector<28x32xf32>, vector<32x168xf32>, vector<28x168xf32> -> vector<28x168xf32>
    %71 = arith.addf %66, %70 : vector<28x168xf32>
    %72 = vector.extract_strided_slice %56 {offsets = [3, 0], sizes = [28, 32], strides = [1, 1]} : vector<32x32xf32> to vector<28x32xf32>
    %c13 = arith.constant 13 : index
    %c0_51 = arith.constant 0 : index
    %c0_52 = arith.constant 0 : index
    %73 = vector.load %arg2[%c13, %c0_51, %c0_52] : memref<15x32x168xf32, #tpu.memory_space<vmem>>, vector<1x32x168xf32>
    %74 = vector.shape_cast %73 : vector<1x32x168xf32> to vector<32x168xf32>
    %cst_53 = arith.constant dense<0.000000e+00> : vector<28x168xf32>
    %75 = tpu.matmul %72, %74, %cst_53 {dimension_numbers = #tpu.dot_dimension_numbers<[1], [0], [0], [1], [0, 0, 1, 1], [], []>} : vector<28x32xf32>, vector<32x168xf32>, vector<28x168xf32> -> vector<28x168xf32>
    %76 = arith.addf %71, %75 : vector<28x168xf32>
    %77 = vector.extract_strided_slice %56 {offsets = [4, 0], sizes = [28, 32], strides = [1, 1]} : vector<32x32xf32> to vector<28x32xf32>
    %c14 = arith.constant 14 : index
    %c0_54 = arith.constant 0 : index
    %c0_55 = arith.constant 0 : index
    %78 = vector.load %arg2[%c14, %c0_54, %c0_55] : memref<15x32x168xf32, #tpu.memory_space<vmem>>, vector<1x32x168xf32>
    %79 = vector.shape_cast %78 : vector<1x32x168xf32> to vector<32x168xf32>
    %cst_56 = arith.constant dense<0.000000e+00> : vector<28x168xf32>
    %80 = tpu.matmul %77, %79, %cst_56 {dimension_numbers = #tpu.dot_dimension_numbers<[1], [0], [0], [1], [0, 0, 1, 1], [], []>} : vector<28x32xf32>, vector<32x168xf32>, vector<28x168xf32> -> vector<28x168xf32>
    %81 = arith.addf %76, %80 : vector<28x168xf32>
    %c0_57 = arith.constant 0 : index
    %c0_58 = arith.constant 0 : index
    %82 = vector.load %arg3[%c0_57, %c0_58] : memref<1x84xf32, #tpu.memory_space<vmem>>, vector<1x84xf32>
    %83 = tpu.iota {dimensions = array<i32: 0>} : vector<14x28xi32>
    %84 = tpu.iota {dimensions = array<i32: 1>} : vector<14x28xi32>
    %c2_i32 = arith.constant 2 : i32
    %85 = vector.broadcast %c2_i32 : i32 to vector<14x28xi32>
    %86 = arith.muli %85, %83 : vector<14x28xi32>
    %c0_i32 = arith.constant 0 : i32
    %87 = vector.broadcast %c0_i32 : i32 to vector<14x28xi32>
    %88 = arith.addi %86, %87 : vector<14x28xi32>
    %89 = arith.cmpi eq, %84, %88 : vector<14x28xi32>
    %90 = arith.extui %89 : vector<14x28xi1> to vector<14x28xi32>
    %91 = arith.sitofp %90 : vector<14x28xi32> to vector<14x28xf32>
    %92 = tpu.iota {dimensions = array<i32: 0>} : vector<14x28xi32>
    %93 = tpu.iota {dimensions = array<i32: 1>} : vector<14x28xi32>
    %c2_i32_59 = arith.constant 2 : i32
    %94 = vector.broadcast %c2_i32_59 : i32 to vector<14x28xi32>
    %95 = arith.muli %94, %92 : vector<14x28xi32>
    %c1_i32 = arith.constant 1 : i32
    %96 = vector.broadcast %c1_i32 : i32 to vector<14x28xi32>
    %97 = arith.addi %95, %96 : vector<14x28xi32>
    %98 = arith.cmpi eq, %93, %97 : vector<14x28xi32>
    %99 = arith.extui %98 : vector<14x28xi1> to vector<14x28xi32>
    %100 = arith.sitofp %99 : vector<14x28xi32> to vector<14x28xf32>
    %cst_60 = arith.constant dense<0.000000e+00> : vector<14x168xf32>
    %101 = tpu.matmul %91, %81, %cst_60 {dimension_numbers = #tpu.dot_dimension_numbers<[1], [0], [0], [1], [0, 0, 1, 1], [], []>} : vector<14x28xf32>, vector<28x168xf32>, vector<14x168xf32> -> vector<14x168xf32>
    %cst_61 = arith.constant dense<0.000000e+00> : vector<14x168xf32>
    %102 = tpu.matmul %100, %81, %cst_61 {dimension_numbers = #tpu.dot_dimension_numbers<[1], [0], [0], [1], [0, 0, 1, 1], [], []>} : vector<14x28xf32>, vector<28x168xf32>, vector<14x168xf32> -> vector<14x168xf32>
    %103 = arith.maximumf %101, %102 : vector<14x168xf32>
    %104 = vector.extract_strided_slice %103 {offsets = [0, 0], sizes = [14, 84], strides = [1, 1]} : vector<14x168xf32> to vector<14x84xf32>
    %105 = vector.extract_strided_slice %103 {offsets = [0, 84], sizes = [14, 84], strides = [1, 1]} : vector<14x168xf32> to vector<14x84xf32>
    %106 = arith.maximumf %104, %105 : vector<14x84xf32>
    %107 = vector.broadcast %82 : vector<1x84xf32> to vector<14x84xf32>
    %108 = arith.addf %106, %107 : vector<14x84xf32>
    %cst_62 = arith.constant 0.000000e+00 : f32
    %109 = vector.broadcast %cst_62 : f32 to vector<14x84xf32>
    %110 = arith.maximumf %108, %109 : vector<14x84xf32>
    %cst_63 = arith.constant 0.000000e+00 : f32
    %111 = vector.broadcast %cst_63 : f32 to vector<10x160xf32>
    %112 = vector.extract_strided_slice %110 {offsets = [0, 0], sizes = [10, 84], strides = [1, 1]} : vector<14x84xf32> to vector<10x84xf32>
    %c0_64 = arith.constant 0 : index
    %c0_65 = arith.constant 0 : index
    %c0_66 = arith.constant 0 : index
    %113 = vector.load %arg4[%c0_64, %c0_65, %c0_66] : memref<5x84x160xf32, #tpu.memory_space<vmem>>, vector<1x84x160xf32>
    %114 = vector.shape_cast %113 : vector<1x84x160xf32> to vector<84x160xf32>
    %cst_67 = arith.constant dense<0.000000e+00> : vector<10x160xf32>
    %115 = tpu.matmul %112, %114, %cst_67 {dimension_numbers = #tpu.dot_dimension_numbers<[1], [0], [0], [1], [0, 0, 1, 1], [], []>} : vector<10x84xf32>, vector<84x160xf32>, vector<10x160xf32> -> vector<10x160xf32>
    %116 = arith.addf %111, %115 : vector<10x160xf32>
    %117 = vector.extract_strided_slice %110 {offsets = [1, 0], sizes = [10, 84], strides = [1, 1]} : vector<14x84xf32> to vector<10x84xf32>
    %c1_68 = arith.constant 1 : index
    %c0_69 = arith.constant 0 : index
    %c0_70 = arith.constant 0 : index
    %118 = vector.load %arg4[%c1_68, %c0_69, %c0_70] : memref<5x84x160xf32, #tpu.memory_space<vmem>>, vector<1x84x160xf32>
    %119 = vector.shape_cast %118 : vector<1x84x160xf32> to vector<84x160xf32>
    %cst_71 = arith.constant dense<0.000000e+00> : vector<10x160xf32>
    %120 = tpu.matmul %117, %119, %cst_71 {dimension_numbers = #tpu.dot_dimension_numbers<[1], [0], [0], [1], [0, 0, 1, 1], [], []>} : vector<10x84xf32>, vector<84x160xf32>, vector<10x160xf32> -> vector<10x160xf32>
    %121 = arith.addf %116, %120 : vector<10x160xf32>
    %122 = vector.extract_strided_slice %110 {offsets = [2, 0], sizes = [10, 84], strides = [1, 1]} : vector<14x84xf32> to vector<10x84xf32>
    %c2_72 = arith.constant 2 : index
    %c0_73 = arith.constant 0 : index
    %c0_74 = arith.constant 0 : index
    %123 = vector.load %arg4[%c2_72, %c0_73, %c0_74] : memref<5x84x160xf32, #tpu.memory_space<vmem>>, vector<1x84x160xf32>
    %124 = vector.shape_cast %123 : vector<1x84x160xf32> to vector<84x160xf32>
    %cst_75 = arith.constant dense<0.000000e+00> : vector<10x160xf32>
    %125 = tpu.matmul %122, %124, %cst_75 {dimension_numbers = #tpu.dot_dimension_numbers<[1], [0], [0], [1], [0, 0, 1, 1], [], []>} : vector<10x84xf32>, vector<84x160xf32>, vector<10x160xf32> -> vector<10x160xf32>
    %126 = arith.addf %121, %125 : vector<10x160xf32>
    %127 = vector.extract_strided_slice %110 {offsets = [3, 0], sizes = [10, 84], strides = [1, 1]} : vector<14x84xf32> to vector<10x84xf32>
    %c3_76 = arith.constant 3 : index
    %c0_77 = arith.constant 0 : index
    %c0_78 = arith.constant 0 : index
    %128 = vector.load %arg4[%c3_76, %c0_77, %c0_78] : memref<5x84x160xf32, #tpu.memory_space<vmem>>, vector<1x84x160xf32>
    %129 = vector.shape_cast %128 : vector<1x84x160xf32> to vector<84x160xf32>
    %cst_79 = arith.constant dense<0.000000e+00> : vector<10x160xf32>
    %130 = tpu.matmul %127, %129, %cst_79 {dimension_numbers = #tpu.dot_dimension_numbers<[1], [0], [0], [1], [0, 0, 1, 1], [], []>} : vector<10x84xf32>, vector<84x160xf32>, vector<10x160xf32> -> vector<10x160xf32>
    %131 = arith.addf %126, %130 : vector<10x160xf32>
    %132 = vector.extract_strided_slice %110 {offsets = [4, 0], sizes = [10, 84], strides = [1, 1]} : vector<14x84xf32> to vector<10x84xf32>
    %c4_80 = arith.constant 4 : index
    %c0_81 = arith.constant 0 : index
    %c0_82 = arith.constant 0 : index
    %133 = vector.load %arg4[%c4_80, %c0_81, %c0_82] : memref<5x84x160xf32, #tpu.memory_space<vmem>>, vector<1x84x160xf32>
    %134 = vector.shape_cast %133 : vector<1x84x160xf32> to vector<84x160xf32>
    %cst_83 = arith.constant dense<0.000000e+00> : vector<10x160xf32>
    %135 = tpu.matmul %132, %134, %cst_83 {dimension_numbers = #tpu.dot_dimension_numbers<[1], [0], [0], [1], [0, 0, 1, 1], [], []>} : vector<10x84xf32>, vector<84x160xf32>, vector<10x160xf32> -> vector<10x160xf32>
    %136 = arith.addf %131, %135 : vector<10x160xf32>
    %c0_84 = arith.constant 0 : index
    %c0_85 = arith.constant 0 : index
    %137 = vector.load %arg5[%c0_84, %c0_85] : memref<1x80xf32, #tpu.memory_space<vmem>>, vector<1x80xf32>
    %138 = tpu.iota {dimensions = array<i32: 0>} : vector<5x10xi32>
    %139 = tpu.iota {dimensions = array<i32: 1>} : vector<5x10xi32>
    %c2_i32_86 = arith.constant 2 : i32
    %140 = vector.broadcast %c2_i32_86 : i32 to vector<5x10xi32>
    %141 = arith.muli %140, %138 : vector<5x10xi32>
    %c0_i32_87 = arith.constant 0 : i32
    %142 = vector.broadcast %c0_i32_87 : i32 to vector<5x10xi32>
    %143 = arith.addi %141, %142 : vector<5x10xi32>
    %144 = arith.cmpi eq, %139, %143 : vector<5x10xi32>
    %145 = arith.extui %144 : vector<5x10xi1> to vector<5x10xi32>
    %146 = arith.sitofp %145 : vector<5x10xi32> to vector<5x10xf32>
    %147 = tpu.iota {dimensions = array<i32: 0>} : vector<5x10xi32>
    %148 = tpu.iota {dimensions = array<i32: 1>} : vector<5x10xi32>
    %c2_i32_88 = arith.constant 2 : i32
    %149 = vector.broadcast %c2_i32_88 : i32 to vector<5x10xi32>
    %150 = arith.muli %149, %147 : vector<5x10xi32>
    %c1_i32_89 = arith.constant 1 : i32
    %151 = vector.broadcast %c1_i32_89 : i32 to vector<5x10xi32>
    %152 = arith.addi %150, %151 : vector<5x10xi32>
    %153 = arith.cmpi eq, %148, %152 : vector<5x10xi32>
    %154 = arith.extui %153 : vector<5x10xi1> to vector<5x10xi32>
    %155 = arith.sitofp %154 : vector<5x10xi32> to vector<5x10xf32>
    %cst_90 = arith.constant dense<0.000000e+00> : vector<5x160xf32>
    %156 = tpu.matmul %146, %136, %cst_90 {dimension_numbers = #tpu.dot_dimension_numbers<[1], [0], [0], [1], [0, 0, 1, 1], [], []>} : vector<5x10xf32>, vector<10x160xf32>, vector<5x160xf32> -> vector<5x160xf32>
    %cst_91 = arith.constant dense<0.000000e+00> : vector<5x160xf32>
    %157 = tpu.matmul %155, %136, %cst_91 {dimension_numbers = #tpu.dot_dimension_numbers<[1], [0], [0], [1], [0, 0, 1, 1], [], []>} : vector<5x10xf32>, vector<10x160xf32>, vector<5x160xf32> -> vector<5x160xf32>
    %158 = arith.maximumf %156, %157 : vector<5x160xf32>
    %159 = vector.extract_strided_slice %158 {offsets = [0, 0], sizes = [5, 80], strides = [1, 1]} : vector<5x160xf32> to vector<5x80xf32>
    %160 = vector.extract_strided_slice %158 {offsets = [0, 80], sizes = [5, 80], strides = [1, 1]} : vector<5x160xf32> to vector<5x80xf32>
    %161 = arith.maximumf %159, %160 : vector<5x80xf32>
    %162 = vector.broadcast %137 : vector<1x80xf32> to vector<5x80xf32>
    %163 = arith.addf %161, %162 : vector<5x80xf32>
    %cst_92 = arith.constant 0.000000e+00 : f32
    %164 = vector.broadcast %cst_92 : f32 to vector<5x80xf32>
    %165 = arith.maximumf %163, %164 : vector<5x80xf32>
    %cst_93 = arith.constant 0.000000e+00 : f32
    %166 = vector.broadcast %cst_93 : f32 to vector<1x128xf32>
    %167 = vector.extract_strided_slice %165 {offsets = [0, 0], sizes = [1, 80], strides = [1, 1]} : vector<5x80xf32> to vector<1x80xf32>
    %c0_94 = arith.constant 0 : index
    %c0_95 = arith.constant 0 : index
    %c0_96 = arith.constant 0 : index
    %168 = vector.load %arg6[%c0_94, %c0_95, %c0_96] : memref<5x80x128xf32, #tpu.memory_space<vmem>>, vector<1x80x128xf32>
    %169 = vector.shape_cast %168 : vector<1x80x128xf32> to vector<80x128xf32>
    %cst_97 = arith.constant dense<0.000000e+00> : vector<1x128xf32>
    %170 = tpu.matmul %167, %169, %cst_97 {dimension_numbers = #tpu.dot_dimension_numbers<[1], [0], [0], [1], [0, 0, 1, 1], [], []>} : vector<1x80xf32>, vector<80x128xf32>, vector<1x128xf32> -> vector<1x128xf32>
    %171 = arith.addf %166, %170 : vector<1x128xf32>
    %172 = vector.extract_strided_slice %165 {offsets = [1, 0], sizes = [1, 80], strides = [1, 1]} : vector<5x80xf32> to vector<1x80xf32>
    %c1_98 = arith.constant 1 : index
    %c0_99 = arith.constant 0 : index
    %c0_100 = arith.constant 0 : index
    %173 = vector.load %arg6[%c1_98, %c0_99, %c0_100] : memref<5x80x128xf32, #tpu.memory_space<vmem>>, vector<1x80x128xf32>
    %174 = vector.shape_cast %173 : vector<1x80x128xf32> to vector<80x128xf32>
    %cst_101 = arith.constant dense<0.000000e+00> : vector<1x128xf32>
    %175 = tpu.matmul %172, %174, %cst_101 {dimension_numbers = #tpu.dot_dimension_numbers<[1], [0], [0], [1], [0, 0, 1, 1], [], []>} : vector<1x80xf32>, vector<80x128xf32>, vector<1x128xf32> -> vector<1x128xf32>
    %176 = arith.addf %171, %175 : vector<1x128xf32>
    %177 = vector.extract_strided_slice %165 {offsets = [2, 0], sizes = [1, 80], strides = [1, 1]} : vector<5x80xf32> to vector<1x80xf32>
    %c2_102 = arith.constant 2 : index
    %c0_103 = arith.constant 0 : index
    %c0_104 = arith.constant 0 : index
    %178 = vector.load %arg6[%c2_102, %c0_103, %c0_104] : memref<5x80x128xf32, #tpu.memory_space<vmem>>, vector<1x80x128xf32>
    %179 = vector.shape_cast %178 : vector<1x80x128xf32> to vector<80x128xf32>
    %cst_105 = arith.constant dense<0.000000e+00> : vector<1x128xf32>
    %180 = tpu.matmul %177, %179, %cst_105 {dimension_numbers = #tpu.dot_dimension_numbers<[1], [0], [0], [1], [0, 0, 1, 1], [], []>} : vector<1x80xf32>, vector<80x128xf32>, vector<1x128xf32> -> vector<1x128xf32>
    %181 = arith.addf %176, %180 : vector<1x128xf32>
    %182 = vector.extract_strided_slice %165 {offsets = [3, 0], sizes = [1, 80], strides = [1, 1]} : vector<5x80xf32> to vector<1x80xf32>
    %c3_106 = arith.constant 3 : index
    %c0_107 = arith.constant 0 : index
    %c0_108 = arith.constant 0 : index
    %183 = vector.load %arg6[%c3_106, %c0_107, %c0_108] : memref<5x80x128xf32, #tpu.memory_space<vmem>>, vector<1x80x128xf32>
    %184 = vector.shape_cast %183 : vector<1x80x128xf32> to vector<80x128xf32>
    %cst_109 = arith.constant dense<0.000000e+00> : vector<1x128xf32>
    %185 = tpu.matmul %182, %184, %cst_109 {dimension_numbers = #tpu.dot_dimension_numbers<[1], [0], [0], [1], [0, 0, 1, 1], [], []>} : vector<1x80xf32>, vector<80x128xf32>, vector<1x128xf32> -> vector<1x128xf32>
    %186 = arith.addf %181, %185 : vector<1x128xf32>
    %187 = vector.extract_strided_slice %165 {offsets = [4, 0], sizes = [1, 80], strides = [1, 1]} : vector<5x80xf32> to vector<1x80xf32>
    %c4_110 = arith.constant 4 : index
    %c0_111 = arith.constant 0 : index
    %c0_112 = arith.constant 0 : index
    %188 = vector.load %arg6[%c4_110, %c0_111, %c0_112] : memref<5x80x128xf32, #tpu.memory_space<vmem>>, vector<1x80x128xf32>
    %189 = vector.shape_cast %188 : vector<1x80x128xf32> to vector<80x128xf32>
    %cst_113 = arith.constant dense<0.000000e+00> : vector<1x128xf32>
    %190 = tpu.matmul %187, %189, %cst_113 {dimension_numbers = #tpu.dot_dimension_numbers<[1], [0], [0], [1], [0, 0, 1, 1], [], []>} : vector<1x80xf32>, vector<80x128xf32>, vector<1x128xf32> -> vector<1x128xf32>
    %191 = arith.addf %186, %190 : vector<1x128xf32>
    %c0_114 = arith.constant 0 : index
    %c0_115 = arith.constant 0 : index
    %192 = vector.load %arg7[%c0_114, %c0_115] : memref<1x128xf32, #tpu.memory_space<vmem>>, vector<1x128xf32>
    %193 = arith.addf %191, %192 : vector<1x128xf32>
    %cst_116 = arith.constant 0.000000e+00 : f32
    %194 = vector.broadcast %cst_116 : f32 to vector<1x128xf32>
    %195 = arith.maximumf %193, %194 : vector<1x128xf32>
    %c0_117 = arith.constant 0 : index
    %c0_118 = arith.constant 0 : index
    %196 = vector.load %arg8[%c0_117, %c0_118] : memref<128x128xf32, #tpu.memory_space<vmem>>, vector<128x128xf32>
    %cst_119 = arith.constant dense<0.000000e+00> : vector<1x128xf32>
    %197 = tpu.matmul %195, %196, %cst_119 {dimension_numbers = #tpu.dot_dimension_numbers<[1], [0], [0], [1], [0, 0, 1, 1], [], []>} : vector<1x128xf32>, vector<128x128xf32>, vector<1x128xf32> -> vector<1x128xf32>
    %c0_120 = arith.constant 0 : index
    %c0_121 = arith.constant 0 : index
    %198 = vector.load %arg9[%c0_120, %c0_121] : memref<1x128xf32, #tpu.memory_space<vmem>>, vector<1x128xf32>
    %199 = arith.addf %197, %198 : vector<1x128xf32>
    %cst_122 = arith.constant 0.000000e+00 : f32
    %200 = vector.broadcast %cst_122 : f32 to vector<1x128xf32>
    %201 = arith.maximumf %199, %200 : vector<1x128xf32>
    %c0_123 = arith.constant 0 : index
    %c0_124 = arith.constant 0 : index
    %202 = vector.load %arg10[%c0_123, %c0_124] : memref<128x10xf32, #tpu.memory_space<vmem>>, vector<128x10xf32>
    %cst_125 = arith.constant dense<0.000000e+00> : vector<1x10xf32>
    %203 = tpu.matmul %201, %202, %cst_125 {dimension_numbers = #tpu.dot_dimension_numbers<[1], [0], [0], [1], [0, 0, 1, 1], [], []>} : vector<1x128xf32>, vector<128x10xf32>, vector<1x10xf32> -> vector<1x10xf32>
    %c0_126 = arith.constant 0 : index
    %c0_127 = arith.constant 0 : index
    %204 = vector.load %arg11[%c0_126, %c0_127] : memref<1x10xf32, #tpu.memory_space<vmem>>, vector<1x10xf32>
    %205 = arith.addf %203, %204 : vector<1x10xf32>
    %c0_128 = arith.constant 0 : index
    %c0_129 = arith.constant 0 : index
    %c0_130 = arith.constant 0 : index
    %206 = vector.load %arg12[%c0_128, %c0_129, %c0_130] : memref<1x1x10xf32, #tpu.memory_space<vmem>>, vector<1x1x10xf32>
    %207 = vector.shape_cast %206 : vector<1x1x10xf32> to vector<1x10xf32>
    %208 = vector.shape_cast %205 : vector<1x10xf32> to vector<1x1x10xf32>
    tpu.vector_store %arg12[%c0_128, %c0_129, %c0_130], %208 {strides = array<i32>} : memref<1x1x10xf32, #tpu.memory_space<vmem>>, vector<1x1x10xf32>,
    return
  }
  func.func @transform_0(%arg0: i32) -> (i32, i32, i32, i32) {
    %c0_i32 = arith.constant 0 : i32
    %c0_i32_0 = arith.constant 0 : i32
    %c0_i32_1 = arith.constant 0 : i32
    %c0_i32_2 = arith.constant 0 : i32
    return %arg0, %c0_i32, %c0_i32_0, %c0_i32_1 : i32, i32, i32, i32
  }
  func.func @transform_1(%arg0: i32) -> (i32, i32, i32) {
    %c0_i32 = arith.constant 0 : i32
    %c0_i32_0 = arith.constant 0 : i32
    %c0_i32_1 = arith.constant 0 : i32
    %c0_i32_2 = arith.constant 0 : i32
    return %c0_i32, %c0_i32_0, %c0_i32_1 : i32, i32, i32
  }
  func.func @transform_2(%arg0: i32) -> (i32, i32) {
    %c0_i32 = arith.constant 0 : i32
    %c0_i32_0 = arith.constant 0 : i32
    %c0_i32_1 = arith.constant 0 : i32
    return %c0_i32, %c0_i32_0 : i32, i32
  }
  func.func @transform_3(%arg0: i32) -> (i32, i32, i32) {
    %c0_i32 = arith.constant 0 : i32
    %c0_i32_0 = arith.constant 0 : i32
    %c0_i32_1 = arith.constant 0 : i32
    %c0_i32_2 = arith.constant 0 : i32
    return %c0_i32, %c0_i32_0, %c0_i32_1 : i32, i32, i32
  }
  func.func @transform_4(%arg0: i32) -> (i32, i32) {
    %c0_i32 = arith.constant 0 : i32
    %c0_i32_0 = arith.constant 0 : i32
    %c0_i32_1 = arith.constant 0 : i32
    return %c0_i32, %c0_i32_0 : i32, i32
  }
  func.func @transform_5(%arg0: i32) -> (i32, i32, i32) {
    %c0_i32 = arith.constant 0 : i32
    %c0_i32_0 = arith.constant 0 : i32
    %c0_i32_1 = arith.constant 0 : i32
    %c0_i32_2 = arith.constant 0 : i32
    return %c0_i32, %c0_i32_0, %c0_i32_1 : i32, i32, i32
  }
  func.func @transform_6(%arg0: i32) -> (i32, i32) {
    %c0_i32 = arith.constant 0 : i32
    %c0_i32_0 = arith.constant 0 : i32
    %c0_i32_1 = arith.constant 0 : i32
    return %c0_i32, %c0_i32_0 : i32, i32
  }
  func.func @transform_7(%arg0: i32) -> (i32, i32) {
    %c0_i32 = arith.constant 0 : i32
    %c0_i32_0 = arith.constant 0 : i32
    %c0_i32_1 = arith.constant 0 : i32
    return %c0_i32, %c0_i32_0 : i32, i32
  }
  func.func @transform_8(%arg0: i32) -> (i32, i32) {
    %c0_i32 = arith.constant 0 : i32
    %c0_i32_0 = arith.constant 0 : i32
    %c0_i32_1 = arith.constant 0 : i32
    return %c0_i32, %c0_i32_0 : i32, i32
  }
  func.func @transform_9(%arg0: i32) -> (i32, i32) {
    %c0_i32 = arith.constant 0 : i32
    %c0_i32_0 = arith.constant 0 : i32
    %c0_i32_1 = arith.constant 0 : i32
    return %c0_i32, %c0_i32_0 : i32, i32
  }
  func.func @transform_10(%arg0: i32) -> (i32, i32) {
    %c0_i32 = arith.constant 0 : i32
    %c0_i32_0 = arith.constant 0 : i32
    %c0_i32_1 = arith.constant 0 : i32
    return %c0_i32, %c0_i32_0 : i32, i32
  }
  func.func @transform_11(%arg0: i32) -> (i32, i32, i32) {
    %c0_i32 = arith.constant 0 : i32
    %c0_i32_0 = arith.constant 0 : i32
    %c0_i32_1 = arith.constant 0 : i32
    return %arg0, %c0_i32, %c0_i32_0 : i32, i32, i32
  }
}

</mosaic_0001>

<bundles_post_ra>
// kernel: simple_cnn_forward.1
= control target key start
LH: loop header
LB: loop body
LE: loop exit
PB: predicated region body
PF: predicated region fallthrough
CT: control target
= control target key end

     0   :  { %s4877_s0 = inlined_call_operand.vmem [shape: f32[2,3,32,32], index: 0, kind: input, shape index: {}]   ;;  %s4878_s1 = inlined_call_operand.vmem [shape: f32[15,32,168], index: 1, kind: input, shape index: {}]   ;;  %s4879_s2 = inlined_call_operand.vmem [shape: f32[1,84], index: 2, kind: input, shape index: {}]   ;;  %s4880_s3 = inlined_call_operand.vmem [shape: f32[5,84,160], index: 3, kind: input, shape index: {}]   ;;  %s4881_s4 = inlined_call_operand.vmem [shape: f32[1,80], index: 4, kind: input, shape index: {}]   ;;  %s4882_s5 = inlined_call_operand.vmem [shape: f32[5,80,128], index: 5, kind: input, shape index: {}]   ;;  %s4883_s6 = inlined_call_operand.vmem [shape: f32[1,128], index: 6, kind: input, shape index: {}]   ;;  %s4884_s7 = inlined_call_operand.vmem [shape: f32[128,128], index: 7, kind: input, shape index: {}]   ;;  %s4885_s8 = inlined_call_operand.vmem [shape: f32[1,128], index: 8, kind: input, shape index: {}]   ;;  %s4886_s9 = inlined_call_operand.vmem [shape: f32[128,10], index: 9, kind: input, shape index: {}]   ;;  %s4887_s10 = inlined_call_operand.vmem [shape: f32[1,10], index: 10, kind: input, shape index: {}]   ;;  %s4888_s11 = inlined_call_operand.hbm [shape: f32[2,1,10], index: 11, kind: output, shape index: {}]  }
   0x1   :  { %4889 = sst [smem:[#allocation6_spill]] %s4877_s0 }
   0x2   :  { %16 = vsyncpa [#allocation3], 0 }
   0x3   :  { %18 = vsyncpa [#allocation3 + $0x1], 0  ;;  %s3348_s17 = smov 0   ;;  %s3350_s18 = smov 0  }
   0x4   :  { %s3352_s19 = smov 0   ;;  %s3354_s20 = smov 0  }
   0x5 LB: > { %s3369_s21 = sadd.s32 4294967295, %s3283_s20   ;;  %s2742_s22 = sadd.s32 4294967294, %s3283_s20   ;;  %s3283_s20 = sphi %s3354_s20, %s4900_s20   ;;  %s3279_s19 = sphi %s3352_s19, %s4899_s19   ;;  %s3275_s18 = sphi %s3350_s18, %s4898_s18   ;;  %s3271_s17 = sphi %s3348_s17, %s4897_s17  }
   0x6   : > { %s3373_s23 = sadd.s32 1, %s3283_s20   ;;  %s267_s24 = sadd.s32 1, %s3279_s19 }
   0x7   : > { %s264_s25 = ssub.s32 %s3283_s20, %s3373_s23  ;;  %p277_p0 = scmp.ne.s32.totalorder %s3279_s19, %s3275_s18 }
   0x8   : > { %p265_p1 = scmp.eq.s32.totalorder %s264_s25, 0  ;;  %p278_p2 = scmp.eq.s32.totalorder %s3369_s21, 1 }
   0x9   : > { %p283_p3 = scmp.ne.s32.totalorder %s3275_s18, %s3271_s17  ;;  %p284_p4 = scmp.eq.s32.totalorder %s2742_s22, 1 }
   0xa   : > { %s3384_s26 = scalar_select %p265_p1, %s3279_s19, %s267_s24  }
   0xb   : > { %p3386_p5 = por %p278_p2, %p277_p0  ;;  %p3390_p6 = por %p284_p4, %p283_p3 }
   0xc   : > { %4890 = sst [smem:[#allocation5_spill]] %s3384_s26  ;;  %p2745_p7 = scmp.ge.s32.totalorder %s3283_s20, 1 }
   0xd   : > { %p340_p8 = scmp.lt.s32.totalorder %s3283_s20, 3 }
   0xf   : > { %p341_p9 = pnand %p2745_p7, %p340_p8 }
  0x10   : > { %p379_p10 = scmp.lt.s32.totalorder (!%p341_p9), %s3369_s21, 1  ;;  %s4893_s0 = sld [smem:[#allocation6_spill]] (!%p341_p9) }
  0x11   : > { %344 = sbr.rel (%p341_p9) target bundleno = 1545 (0x609), region = 64  ;;  %s3286_s12 = smov (!%p341_p9), 44  }
  0x12   : > { %s3287_s15 = smov (!%p341_p9), 48   ;;  %s377_s26 = sand.u32 (!%p341_p9), 1, %s3275_s18  }
  0x13   : > { %s2683_s13 = scalar_lea.hbm (!%p341_p9), %s4888_s11, %s3369_s21  ;;  %s2675_s22 = scalar_lea.sflag (!%p341_p9), [#allocation3], %s377_s26 }
  0x16   : > { %v394_v0 = vld [vmem:[%s4878_s1 + $0x30] sm:$0xff]  ;;  %v395_v1 = vld [vmem:[%s4878_s1 + $0x38] sm:$0xff]  ;;  %v392_v2 = vld [vmem:[%s4878_s1 + $0x20] sm:$0xff]  ;;  %s380_s24 = scalar_select %p379_p10, %s3369_s21, 1  ;;  %vm417_vm0 = vcmask 261120   ;;  %vm409_vm1 = vcmask 1046528  }
  0x17   : > { %504 = vmatpush.msra.mxu2 %v394_v0  ;;  %533 = vmatpush.msra.mxu3 %v395_v1  ;;  %v393_v3 = vld [vmem:[%s4878_s1 + $0x28] sm:$0xff]  ;;  %v2753_v4 = vld [vmem:[%s4878_s1 + $0x70] sm:$0xff]  ;;  %v2754_v5 = vld [vmem:[%s4878_s1 + $0x78] sm:$0xff]  ;;  %vm650_vm2 = vcmask 1044480   ;;  %vm559_vm3 = vcmask 1045504   ;;  %vm741_vm4 = vcmask 1043456  }
  0x18   : > { %438 = vmatpush.msra.mxu0 %v2753_v4  ;;  %467 = vmatpush.msra.mxu1 %v2754_v5  ;;  %v390_v6 = vld [vmem:[%s4878_s1 + $0x10] sm:$0xff]  ;;  %v391_v7 = vld [vmem:[%s4878_s1 + $0x18] sm:$0xff]  ;;  %v2751_v8 = vld [vmem:[%s4878_s1 + $0x60] sm:$0xff]  ;;  %s3176_s25 = smul.u32 96, %s380_s24  ;;  %vm1749_vm7 = vcmask 228352   ;;  %vm1876_vm10 = vcmask 359424  }
  0x19   : > { %505 = vmatpush.msra.mxu2 %v392_v2  ;;  %534 = vmatpush.msra.mxu3 %v393_v3  ;;  %v2752_v9 = vld [vmem:[%s4878_s1 + $0x68] sm:$0xff]  ;;  %v388_v10 = vld [vmem:[%s4878_s1] sm:$0xff]  ;;  %v2749_v12 = vld [vmem:[%s4878_s1 + $0x50] sm:$0xff]  ;;  %vm1940_vm11 = vcmask 687104   ;;  %vm2315_vm12 = vcmask 1041408   ;;  %vm2312_vm13 = vcmask 80896  }
  0x1a   : > { %439 = vmatpush.msra.mxu0 %v2751_v8  ;;  %468 = vmatpush.msra.mxu1 %v2752_v9  ;;  %v389_v11 = vld [vmem:[%s4878_s1 + $0x8] sm:$0xff]  ;;  %v2750_v13 = vld [vmem:[%s4878_s1 + $0x58] sm:$0xff]  ;;  %s3443_s30 = scalar_lea.vmem %s4893_s0, %s3176_s25  ;;  %v2747_v14 = vld [vmem:[%s4878_s1 + $0x40] sm:$0xff]  ;;  %vm2412_vm14 = vcmask 392192   ;;  %vm2444_vm15 = vcmask 654336   ;;  %s378_s24 = scalar_lea.vmem [#allocation2], %s377_s26 }
  0x1b   : > { %506 = vmatpush.msra.mxu2 %v390_v6  ;;  %535 = vmatpush.msra.mxu3 %v391_v7  ;;  %v2748_v15 = vld [vmem:[%s4878_s1 + $0x48] sm:$0xff]  ;;  %v2793_v16 = vld [vmem:[%s4878_s1 + $0xf0] sm:$0xff]  ;;  %v3455_v17 = vld [vmem:[%s3443_s30] sm:$0xff]  ;;  %s2685_s16 = sshll.u32 %s378_s24, 4  ;;  %s2686_s16 = int_to_ptr.vmem [resolvable:$true] %s2685_s16 }
  0x1c   : > { %440 = vmatpush.msra.mxu0 %v2749_v12  ;;  %469 = vmatpush.msra.mxu1 %v2750_v13  ;;  %v3458_v18 = vld [vmem:[%s3443_s30 + $0x8] sm:$0xff]  ;;  %v2794_v19 = vld [vmem:[%s4878_s1 + $0xf8] sm:$0xff]  ;;  %v410_v20 = vrot.slane %v3455_v17, 1  ;;  %v3470_v22 = vld [vmem:[%s3443_s30 + $0x10] sm:$0xff]  ;;  %v651_v45 = vrot.slane %v3455_v17, 3  ;;  %v560_v52 = vrot.slane %v3455_v17, 2 }
  0x1d   : > { %507 = vmatpush.msra.mxu2 %v388_v10  ;;  %536 = vmatpush.msra.mxu3 %v389_v11  ;;  %v411_v21 = vrot.slane %v3458_v18, 1  ;;  %v2791_v23 = vld [vmem:[%s4878_s1 + $0xe0] sm:$0xff]  ;;  %v2792_v24 = vld [vmem:[%s4878_s1 + $0xe8] sm:$0xff]  ;;  %v2777_v26 = vld [vmem:[%s4878_s1 + $0xb0] sm:$0xff]  ;;  %v413_v31 = vrot.slane %v3470_v22, 1  ;;  %v652_v46 = vrot.slane %v3458_v18, 3 }
  0x1e   : > { %2763 = vmatmul.msk.f32.vlgmr.msra.gmra.mxu2 %vm417_vm0, %v3455_v17  ;;  %2767 = vmatmul.msk.f32.vlgmr.msra.gmra.mxu3 %vm417_vm0, %v3455_v17  ;;  %v2778_v27 = vld [vmem:[%s4878_s1 + $0xb8] sm:$0xff]  ;;  %v2789_v28 = vld [vmem:[%s4878_s1 + $0xd0] sm:$0xff]  ;;  %v2775_v30 = vld [vmem:[%s4878_s1 + $0xa0] sm:$0xff]  ;;  %v561_v53 = vrot.slane %v3458_v18, 2  ;;  %v742_v63 = vrot.slane %v3455_v17, 4  ;;  %v743_v0 = vrot.slane %v3458_v18, 4 }
  0x1f   : > { %441 = vmatpush.msra.mxu0 %v2747_v14  ;;  %470 = vmatpush.msra.mxu1 %v2748_v15  ;;  %v412_v25 = vsel %vm409_vm1, %v410_v20, %v411_v21  ;;  %v2790_v29 = vld [vmem:[%s4878_s1 + $0xd8] sm:$0xff]  ;;  %v2776_v32 = vld [vmem:[%s4878_s1 + $0xa8] sm:$0xff]  ;;  %v2787_v33 = vld [vmem:[%s4878_s1 + $0xc0] sm:$0xff]  ;;  %v414_v37 = vsel %vm409_vm1, %v411_v21, %v413_v31  ;;  %v653_v57 = vsel %vm650_vm2, %v651_v45, %v652_v46  ;;  %v654_v1 = vrot.slane %v3470_v22, 3 }
  0x20   : > { %678 = vmatpush.msrb.mxu2 %v2793_v16  ;;  %707 = vmatpush.msrb.mxu3 %v2794_v19  ;;  %v2788_v34 = vld [vmem:[%s4878_s1 + $0xc8] sm:$0xff]  ;;  %v2773_v35 = vld [vmem:[%s4878_s1 + $0x90] sm:$0xff]  ;;  %v2774_v36 = vld [vmem:[%s4878_s1 + $0x98] sm:$0xff]  ;;  %v562_v62 = vsel %vm559_vm3, %v560_v52, %v561_v53  ;;  %v744_v4 = vsel %vm741_vm4, %v742_v63, %v743_v0  ;;  %v563_v5 = vrot.slane %v3470_v22, 2  ;;  %v745_v8 = vrot.slane %v3470_v22, 4 }
  0x21   : > { %2755 = vmatmul.msk.f32.vlgmr.msra.gmra.mxu0 %vm417_vm0, %v412_v25  ;;  %2759 = vmatmul.msk.f32.vlgmr.msra.gmra.mxu1 %vm417_vm0, %v412_v25  ;;  %v3518_v38 = vld [vmem:[%s3443_s30 + $0x18] sm:$0xff]  ;;  %v2771_v39 = vld [vmem:[%s4878_s1 + $0x80] sm:$0xff]  ;;  %v2772_v40 = vld [vmem:[%s4878_s1 + $0x88] sm:$0xff]  ;;  %v655_v6 = vsel %vm650_vm2, %v652_v46, %v654_v1 }
  0x22   : > { %679 = vmatpush.msrb.mxu2 %v2791_v23  ;;  %708 = vmatpush.msrb.mxu3 %v2792_v24  ;;  %v415_v41 = vrot.slane %v3518_v38, 1  ;;  %v2829_v43 = vld [vmem:[%s4878_s1 + $0x170] sm:$0xff]  ;;  %v2830_v44 = vld [vmem:[%s4878_s1 + $0x178] sm:$0xff]  ;;  %v2827_v47 = vld [vmem:[%s4878_s1 + $0x160] sm:$0xff]  ;;  %v564_v7 = vsel %vm559_vm3, %v561_v53, %v563_v5  ;;  %v656_v9 = vrot.slane %v3518_v38, 3  ;;  %v746_v10 = vsel %vm741_vm4, %v743_v0, %v745_v8 }
  0x23   : > { %587 = vmatpush.msrb.mxu0 %v2777_v26  ;;  %616 = vmatpush.msrb.mxu1 %v2778_v27  ;;  %v2828_v48 = vld [vmem:[%s4878_s1 + $0x168] sm:$0xff]  ;;  %v2809_v49 = vld [vmem:[%s4878_s1 + $0x130] sm:$0xff]  ;;  %v2810_v50 = vld [vmem:[%s4878_s1 + $0x138] sm:$0xff]  ;;  %v565_v11 = vrot.slane %v3518_v38, 2  ;;  %v3620_v14 = vrot.slane %v3518_v38, 4 }
  0x24   : > { %680 = vmatpush.msrb.mxu2 %v2789_v28  ;;  %709 = vmatpush.msrb.mxu3 %v2790_v29  ;;  %v416_v42 = vsel %vm409_vm1, %v413_v31, %v415_v41  ;;  %v2825_v51 = vld [vmem:[%s4878_s1 + $0x150] sm:$0xff]  ;;  %v2826_v54 = vld [vmem:[%s4878_s1 + $0x158] sm:$0xff]  ;;  %v2807_v55 = vld [vmem:[%s4878_s1 + $0x120] sm:$0xff]  ;;  %v657_v12 = vsel %vm650_vm2, %v654_v1, %v656_v9 }
  0x25   : > { %588 = vmatpush.msrb.mxu0 %v2775_v30  ;;  %617 = vmatpush.msrb.mxu1 %v2776_v32  ;;  %v2808_v56 = vld [vmem:[%s4878_s1 + $0x128] sm:$0xff]  ;;  %v2823_v58 = vld [vmem:[%s4878_s1 + $0x140] sm:$0xff]  ;;  %v2805_v60 = vld [vmem:[%s4878_s1 + $0x110] sm:$0xff]  ;;  %v566_v13 = vsel %vm559_vm3, %v563_v5, %v565_v11  ;;  %v748_v15 = vsel %vm741_vm4, %v745_v8, %v3620_v14 }
  0x26   : > { %2764 = vmatmul.msk.f32.gmra.mxu2 %vm417_vm0, %v3458_v18  ;;  %2768 = vmatmul.msk.f32.gmra.mxu3 %vm417_vm0, %v3458_v18  ;;  %v2824_v59 = vld [vmem:[%s4878_s1 + $0x148] sm:$0xff]  ;;  %v2806_v61 = vld [vmem:[%s4878_s1 + $0x118] sm:$0xff]  ;;  %v2803_v2 = vld [vmem:[%s4878_s1 + $0x100] sm:$0xff] }
  0x27   : > { %681 = vmatpush.msrb.mxu2 %v2787_v33  ;;  %710 = vmatpush.msrb.mxu3 %v2788_v34  ;;  %v2804_v3 = vld [vmem:[%s4878_s1 + $0x108] sm:$0xff]  ;;  %v2861_v16 = vld [vmem:[%s4878_s1 + $0x1f0] sm:$0xff]  ;;  %v2862_v17 = vld [vmem:[%s4878_s1 + $0x1f8] sm:$0xff] }
  0x28   : > { %589 = vmatpush.msrb.mxu0 %v2773_v35  ;;  %618 = vmatpush.msrb.mxu1 %v2774_v36  ;;  %v2859_v18 = vld [vmem:[%s4878_s1 + $0x1e0] sm:$0xff]  ;;  %v2860_v19 = vld [vmem:[%s4878_s1 + $0x1e8] sm:$0xff]  ;;  %v2845_v20 = vld [vmem:[%s4878_s1 + $0x1b0] sm:$0xff] }
  0x29   : > { %2756 = vmatmul.msk.f32.gmra.mxu0 %vm417_vm0, %v414_v37  ;;  %2760 = vmatmul.msk.f32.gmra.mxu1 %vm417_vm0, %v414_v37  ;;  %v2846_v21 = vld [vmem:[%s4878_s1 + $0x1b8] sm:$0xff]  ;;  %v2843_v24 = vld [vmem:[%s4878_s1 + $0x1a0] sm:$0xff]  ;;  %v2844_v25 = vld [vmem:[%s4878_s1 + $0x1a8] sm:$0xff] }
  0x2a   : > { %590 = vmatpush.msrb.mxu0 %v2771_v39  ;;  %619 = vmatpush.msrb.mxu1 %v2772_v40  ;;  %v2858_v23 = vld [vmem:[%s4878_s1 + $0x1d8] sm:$0xff]  ;;  %v3661_v26 = vld [vmem:[%s3443_s30 + $0x20] sm:$0xff]  ;;  %v2856_v28 = vld [vmem:[%s4878_s1 + $0x1c8] sm:$0xff] }
  0x2b   : > { %861 = vmatpush.msra.mxu2 %v2829_v43  ;;  %890 = vmatpush.msra.mxu3 %v2830_v44  ;;  %v2855_v27 = vld [vmem:[%s4878_s1 + $0x1c0] sm:$0xff]  ;;  %v2841_v29 = vld [vmem:[%s4878_s1 + $0x190] sm:$0xff]  ;;  %v2842_v30 = vld [vmem:[%s4878_s1 + $0x198] sm:$0xff]  ;;  %v924_v45 = vrot.slane %v3661_v26, 1 }
  0x2c   : > { %769 = vmatpush.msra.mxu0 %v2809_v49  ;;  %798 = vmatpush.msra.mxu1 %v2810_v50  ;;  %v2839_v31 = vld [vmem:[%s4878_s1 + $0x180] sm:$0xff]  ;;  %v2840_v32 = vld [vmem:[%s4878_s1 + $0x188] sm:$0xff]  ;;  %v3697_v34 = vld [vmem:[%s3443_s30 + $0x30] sm:$0xff] }
  0x2d   : > { %862 = vmatpush.msra.mxu2 %v2827_v47  ;;  %891 = vmatpush.msra.mxu3 %v2828_v48  ;;  %v3688_v33 = vld [vmem:[%s3443_s30 + $0x28] sm:$0xff]  ;;  %v3706_v35 = vld [vmem:[%s3443_s30 + $0x38] sm:$0xff]  ;;  %v2893_v36 = vld [vmem:[%s4878_s1 + $0x270] sm:$0xff] }
  0x2e   : > { %2765 = vmatmul.msk.f32.gmra.mxu2 %vm417_vm0, %v3470_v22  ;;  %2769 = vmatmul.msk.f32.gmra.mxu3 %vm417_vm0, %v3470_v22  ;;  %v2857_v22 = vld [vmem:[%s4878_s1 + $0x1d0] sm:$0xff]  ;;  %v2894_v37 = vld [vmem:[%s4878_s1 + $0x278] sm:$0xff]  ;;  %v1015_v39 = vrot.slane %v3688_v33, 2  ;;  %v2891_v40 = vld [vmem:[%s4878_s1 + $0x260] sm:$0xff]  ;;  %v925_v46 = vrot.slane %v3688_v33, 1  ;;  %v929_v63 = vrot.slane %v3706_v35, 1 }
  0x2f   : > { %863 = vmatpush.msra.mxu2 %v2825_v51  ;;  %892 = vmatpush.msra.mxu3 %v2826_v54  ;;  %v2878_v43 = vld [vmem:[%s4878_s1 + $0x238] sm:$0xff]  ;;  %v2889_v44 = vld [vmem:[%s4878_s1 + $0x250] sm:$0xff]  ;;  %v2875_v48 = vld [vmem:[%s4878_s1 + $0x220] sm:$0xff]  ;;  %v1195_v5 = vrot.slane %v3688_v33, 4 }
  0x30   : > { %770 = vmatpush.msra.mxu0 %v2807_v55  ;;  %799 = vmatpush.msra.mxu1 %v2808_v56  ;;  %v2890_v47 = vld [vmem:[%s4878_s1 + $0x258] sm:$0xff]  ;;  %v2876_v49 = vld [vmem:[%s4878_s1 + $0x228] sm:$0xff]  ;;  %v2887_v51 = vld [vmem:[%s4878_s1 + $0x240] sm:$0xff]  ;;  %v926_v55 = vsel %vm409_vm1, %v924_v45, %v925_v46  ;;  %v1017_v56 = vrot.slane %v3697_v34, 2 }
  0x31   : > { %2757 = vmatmul.msk.f32.gmra.mxu0 %vm417_vm0, %v416_v42  ;;  %2761 = vmatmul.msk.f32.gmra.mxu1 %vm417_vm0, %v416_v42  ;;  %v2877_v42 = vld [vmem:[%s4878_s1 + $0x230] sm:$0xff]  ;;  %v2888_v52 = vld [vmem:[%s4878_s1 + $0x248] sm:$0xff]  ;;  %v2874_v54 = vld [vmem:[%s4878_s1 + $0x218] sm:$0xff] }
  0x32   : > { %864 = vmatpush.msra.mxu2 %v2823_v58  ;;  %893 = vmatpush.msra.mxu3 %v2824_v59  ;;  %v2873_v53 = vld [vmem:[%s4878_s1 + $0x210] sm:$0xff]  ;;  %v2872_v58 = vld [vmem:[%s4878_s1 + $0x208] sm:$0xff]  ;;  %v927_v59 = vrot.slane %v3697_v34, 1 }
  0x33   : > { %771 = vmatpush.msra.mxu0 %v2805_v60  ;;  %800 = vmatpush.msra.mxu1 %v2806_v61  ;;  %v1018_v60 = vsel %vm559_vm3, %v1015_v39, %v1017_v56  ;;  %v2913_v8 = vld [vmem:[%s4878_s1 + $0x2b0] sm:$0xff] }
  0x34   : > { %v928_v61 = vsel %vm409_vm1, %v925_v46, %v927_v59  ;;  %v930_v1 = vsel %vm409_vm1, %v927_v59, %v929_v63  ;;  %v2960_v59 = vld [vmem:[%s4878_s1 + $0x368] sm:$0xff] }
  0x35   : > { %772 = vmatpush.msra.mxu0 %v2803_v2  ;;  %801 = vmatpush.msra.mxu1 %v2804_v3  ;;  %v2929_v2 = vld [vmem:[%s4878_s1 + $0x2f0] sm:$0xff]  ;;  %v2930_v3 = vld [vmem:[%s4878_s1 + $0x2f8] sm:$0xff] }
  0x36   : > { %2766 = vmatmul.msk.f32.gmra.mxu2 %vm417_vm0, %v3518_v38  ;;  %2770 = vmatmul.msk.f32.gmra.mxu3 %vm417_vm0, %v3518_v38  ;;  %v1014_v38 = vrot.slane %v3661_v26, 2 }
  0x38   : > { %v1016_v50 = vsel %vm559_vm3, %v1014_v38, %v1015_v39  ;;  %v1199_v38 = vrot.slane %v3706_v35, 4 }
  0x39   : > { %2758 = vmatmul.msk.f32.gmra.mxu0 %vm417_vm0, %v415_v41  ;;  %2762 = vmatmul.msk.f32.gmra.mxu1 %vm417_vm0, %v415_v41  ;;  %v2892_v41 = vld [vmem:[%s4878_s1 + $0x268] sm:$0xff] }
  0x3e   : > { %2795 = vmatmul.msk.f32.vlgmr.msrb.gmra.mxu2 %vm417_vm0, %v653_v57  ;;  %2799 = vmatmul.msk.f32.vlgmr.msrb.gmra.mxu3 %vm417_vm0, %v653_v57  ;;  %v2871_v57 = vld [vmem:[%s4878_s1 + $0x200] sm:$0xff] }
  0x3f   : > { %1041 = vmatpush.msrb.mxu2 %v2861_v16  ;;  %1070 = vmatpush.msrb.mxu3 %v2862_v17  ;;  %v2912_v16 = vld [vmem:[%s4878_s1 + $0x2a8] sm:$0xff]  ;;  %v2923_v17 = vld [vmem:[%s4878_s1 + $0x2c0] sm:$0xff] }
  0x41   : > { %2779 = vmatmul.msk.f32.vlgmr.msrb.gmra.mxu0 %vm417_vm0, %v562_v62  ;;  %2783 = vmatmul.msk.f32.vlgmr.msrb.gmra.mxu1 %vm417_vm0, %v562_v62  ;;  %v1019_v62 = vrot.slane %v3706_v35, 2 }
  0x42   : > { %1042 = vmatpush.msrb.mxu2 %v2859_v18  ;;  %1071 = vmatpush.msrb.mxu3 %v2860_v19  ;;  %v2924_v18 = vld [vmem:[%s4878_s1 + $0x2c8] sm:$0xff]  ;;  %v2909_v19 = vld [vmem:[%s4878_s1 + $0x290] sm:$0xff] }
  0x43   : > { %951 = vmatpush.msrb.mxu0 %v2845_v20  ;;  %980 = vmatpush.msrb.mxu1 %v2846_v21  ;;  %v1020_v0 = vsel %vm559_vm3, %v1017_v56, %v1019_v62  ;;  %v2910_v20 = vld [vmem:[%s4878_s1 + $0x298] sm:$0xff] }
  0x44   : > { %1043 = vmatpush.msrb.mxu2 %v2857_v22  ;;  %1072 = vmatpush.msrb.mxu3 %v2858_v23 }
  0x45   : > { %952 = vmatpush.msrb.mxu0 %v2843_v24  ;;  %981 = vmatpush.msrb.mxu1 %v2844_v25  ;;  %v1197_v24 = vrot.slane %v3697_v34, 4  ;;  %v2907_v25 = vld [vmem:[%s4878_s1 + $0x280] sm:$0xff] }
  0x46   : > { %2796 = vmatmul.msk.f32.gmra.mxu2 %vm417_vm0, %v655_v6  ;;  %2800 = vmatmul.msk.f32.gmra.mxu3 %vm417_vm0, %v655_v6  ;;  %v2927_v6 = vld [vmem:[%s4878_s1 + $0x2e0] sm:$0xff] }
  0x47   : > { %1044 = vmatpush.msrb.mxu2 %v2855_v27  ;;  %1073 = vmatpush.msrb.mxu3 %v2856_v28 }
  0x48   : > { %953 = vmatpush.msrb.mxu0 %v2841_v29  ;;  %982 = vmatpush.msrb.mxu1 %v2842_v30 }
  0x49   : > { %2780 = vmatmul.msk.f32.gmra.mxu0 %vm417_vm0, %v564_v7  ;;  %2784 = vmatmul.msk.f32.gmra.mxu1 %vm417_vm0, %v564_v7  ;;  %v2928_v7 = vld [vmem:[%s4878_s1 + $0x2e8] sm:$0xff] }
  0x4a   : > { %954 = vmatpush.msrb.mxu0 %v2839_v31  ;;  %983 = vmatpush.msrb.mxu1 %v2840_v32  ;;  %v1107_v31 = vrot.slane %v3697_v34, 3  ;;  %v1198_v32 = vsel %vm741_vm4, %v1195_v5, %v1197_v24 }
  0x4e   : > { %2797 = vmatmul.msk.f32.gmra.mxu2 %vm417_vm0, %v657_v12  ;;  %2801 = vmatmul.msk.f32.gmra.mxu3 %vm417_vm0, %v657_v12  ;;  %v2925_v12 = vld [vmem:[%s4878_s1 + $0x2d0] sm:$0xff] }
  0x51   : > { %2781 = vmatmul.msk.f32.gmra.mxu0 %vm417_vm0, %v566_v13  ;;  %2785 = vmatmul.msk.f32.gmra.mxu1 %vm417_vm0, %v566_v13  ;;  %v2926_v13 = vld [vmem:[%s4878_s1 + $0x2d8] sm:$0xff] }
  0x56   : > { %2798 = vmatmul.msk.f32.gmra.mxu2 %vm417_vm0, %v656_v9  ;;  %2802 = vmatmul.msk.f32.gmra.mxu3 %vm417_vm0, %v656_v9  ;;  %v2914_v9 = vld [vmem:[%s4878_s1 + $0x2b8] sm:$0xff] }
  0x59   : > { %2782 = vmatmul.msk.f32.gmra.mxu0 %vm417_vm0, %v565_v11  ;;  %2786 = vmatmul.msk.f32.gmra.mxu1 %vm417_vm0, %v565_v11  ;;  %v1105_v11 = vrot.slane %v3688_v33, 3 }
  0x5e   : > { %2831 = vmatmul.msk.f32.vlgmr.msra.gmra.mxu2 %vm417_vm0, %v3661_v26  ;;  %2835 = vmatmul.msk.f32.vlgmr.msra.gmra.mxu3 %vm417_vm0, %v3661_v26 }
  0x5f   : > { %1221 = vmatpush.msra.mxu2 %v2893_v36  ;;  %1250 = vmatpush.msra.mxu3 %v2894_v37  ;;  %v1108_v37 = vsel %vm650_vm2, %v1105_v11, %v1107_v31 }
  0x61   : > { %2811 = vmatmul.msk.f32.vlgmr.msra.gmra.mxu0 %vm417_vm0, %v744_v4  ;;  %2815 = vmatmul.msk.f32.vlgmr.msra.gmra.mxu1 %vm417_vm0, %v744_v4  ;;  %v1194_v4 = vrot.slane %v3661_v26, 4 }
  0x62   : > { %1222 = vmatpush.msra.mxu2 %v2891_v40  ;;  %1251 = vmatpush.msra.mxu3 %v2892_v41 }
  0x63   : > { %1131 = vmatpush.msra.mxu0 %v2877_v42  ;;  %1160 = vmatpush.msra.mxu1 %v2878_v43  ;;  %v1109_v42 = vrot.slane %v3706_v35, 3  ;;  %v1200_v43 = vsel %vm741_vm4, %v1197_v24, %v1199_v38 }
  0x64   : > { %1223 = vmatpush.msra.mxu2 %v2889_v44  ;;  %1252 = vmatpush.msra.mxu3 %v2890_v47 }
  0x65   : > { %1132 = vmatpush.msra.mxu0 %v2875_v48  ;;  %1161 = vmatpush.msra.mxu1 %v2876_v49  ;;  %v1110_v46 = vsel %vm650_vm2, %v1107_v31, %v1109_v42 }
  0x66   : > { %2832 = vmatmul.msk.f32.gmra.mxu2 %vm417_vm0, %v3688_v33  ;;  %2836 = vmatmul.msk.f32.gmra.mxu3 %vm417_vm0, %v3688_v33 }
  0x67   : > { %1224 = vmatpush.msra.mxu2 %v2887_v51  ;;  %1253 = vmatpush.msra.mxu3 %v2888_v52  ;;  %v3884_v51 = vld [vmem:[%s3443_s30 + $0x48] sm:$0xff] }
  0x68   : > { %1133 = vmatpush.msra.mxu0 %v2873_v53  ;;  %1162 = vmatpush.msra.mxu1 %v2874_v54  ;;  %v2961_v54 = vld [vmem:[%s4878_s1 + $0x370] sm:$0xff] }
  0x69   : > { %2812 = vmatmul.msk.f32.gmra.mxu0 %vm417_vm0, %v746_v10  ;;  %2816 = vmatmul.msk.f32.gmra.mxu1 %vm417_vm0, %v746_v10  ;;  %v1104_v10 = vrot.slane %v3661_v26, 3  ;;  %v2908_v26 = vld [vmem:[%s4878_s1 + $0x288] sm:$0xff] }
  0x6a   : > { %1134 = vmatpush.msra.mxu0 %v2871_v57  ;;  %1163 = vmatpush.msra.mxu1 %v2872_v58  ;;  %v1377_v57 = vrot.slane %v3884_v51, 1  ;;  %v2959_v58 = vld [vmem:[%s4878_s1 + $0x360] sm:$0xff] }
  0x6b   : > { %v1106_v23 = vsel %vm650_vm2, %v1104_v10, %v1105_v11  ;;  %v2941_v10 = vld [vmem:[%s4878_s1 + $0x310] sm:$0xff]  ;;  %v2942_v11 = vld [vmem:[%s4878_s1 + $0x318] sm:$0xff] }
  0x6e   : > { %2833 = vmatmul.msk.f32.gmra.mxu2 %vm417_vm0, %v3697_v34  ;;  %2837 = vmatmul.msk.f32.gmra.mxu3 %vm417_vm0, %v3697_v34 }
  0x71   : > { %2813 = vmatmul.msk.f32.gmra.mxu0 %vm417_vm0, %v748_v15  ;;  %2817 = vmatmul.msk.f32.gmra.mxu1 %vm417_vm0, %v748_v15  ;;  %v1196_v15 = vsel %vm741_vm4, %v1194_v4, %v1195_v5  ;;  %v2943_v4 = vld [vmem:[%s4878_s1 + $0x320] sm:$0xff] }
  0x76   : > { %2834 = vmatmul.msk.f32.gmra.mxu2 %vm417_vm0, %v3706_v35  ;;  %2838 = vmatmul.msk.f32.gmra.mxu3 %vm417_vm0, %v3706_v35  ;;  %v3881_v35 = vld [vmem:[%s3443_s30 + $0x40] sm:$0xff] }
  0x77   : > { %v1376_v56 = vrot.slane %v3881_v35, 1 }
  0x79   : > { %2814 = vmatmul.msk.f32.gmra.mxu0 %vm417_vm0, %v3620_v14  ;;  %2818 = vmatmul.msk.f32.gmra.mxu1 %vm417_vm0, %v3620_v14  ;;  %v2911_v14 = vld [vmem:[%s4878_s1 + $0x2a0] sm:$0xff]  ;;  %v1378_v5 = vsel %vm409_vm1, %v1376_v56, %v1377_v57 }
  0x7e   : > { %2863 = vmatmul.msk.f32.vlgmr.msrb.gmra.mxu2 %vm417_vm0, %v1016_v50  ;;  %2867 = vmatmul.msk.f32.vlgmr.msrb.gmra.mxu3 %vm417_vm0, %v1016_v50 }
  0x7f   : > { %1403 = vmatpush.msrb.mxu2 %v2929_v2  ;;  %1432 = vmatpush.msrb.mxu3 %v2930_v3  ;;  %v2957_v2 = vld [vmem:[%s4878_s1 + $0x350] sm:$0xff]  ;;  %v2958_v3 = vld [vmem:[%s4878_s1 + $0x358] sm:$0xff] }
  0x81   : > { %2847 = vmatmul.msk.f32.vlgmr.msrb.gmra.mxu0 %vm417_vm0, %v926_v55  ;;  %2851 = vmatmul.msk.f32.vlgmr.msrb.gmra.mxu1 %vm417_vm0, %v926_v55  ;;  %v2962_v55 = vld [vmem:[%s4878_s1 + $0x378] sm:$0xff] }
  0x82   : > { %1404 = vmatpush.msrb.mxu2 %v2927_v6  ;;  %1433 = vmatpush.msrb.mxu3 %v2928_v7  ;;  %v2944_v6 = vld [vmem:[%s4878_s1 + $0x328] sm:$0xff]  ;;  %v3928_v7 = vld [vmem:[%s3443_s30 + $0x50] sm:$0xff] }
  0x83   : > { %1313 = vmatpush.msrb.mxu0 %v2913_v8  ;;  %1342 = vmatpush.msrb.mxu1 %v2914_v9  ;;  %v2955_v8 = vld [vmem:[%s4878_s1 + $0x340] sm:$0xff]  ;;  %v2956_v9 = vld [vmem:[%s4878_s1 + $0x348] sm:$0xff] }
  0x84   : > { %1405 = vmatpush.msrb.mxu2 %v2925_v12  ;;  %1434 = vmatpush.msrb.mxu3 %v2926_v13 }
  0x85   : > { %1314 = vmatpush.msrb.mxu0 %v2911_v14  ;;  %1343 = vmatpush.msrb.mxu1 %v2912_v16  ;;  %v1379_v14 = vrot.slane %v3928_v7, 1  ;;  %v2940_v16 = vld [vmem:[%s4878_s1 + $0x308] sm:$0xff] }
  0x86   : > { %2864 = vmatmul.msk.f32.gmra.mxu2 %vm417_vm0, %v1018_v60  ;;  %2868 = vmatmul.msk.f32.gmra.mxu3 %vm417_vm0, %v1018_v60 }
  0x87   : > { %1406 = vmatpush.msrb.mxu2 %v2923_v17  ;;  %1435 = vmatpush.msrb.mxu3 %v2924_v18 }
  0x88   : > { %1315 = vmatpush.msrb.mxu0 %v2909_v19  ;;  %1344 = vmatpush.msrb.mxu1 %v2910_v20  ;;  %v1380_v19 = vsel %vm409_vm1, %v1377_v57, %v1379_v14  ;;  %v3965_v20 = vld [vmem:[%s3443_s30 + $0x58] sm:$0xff]  ;;  %v1559_v57 = vrot.slane %v3928_v7, 3  ;;  %s2687_s30 = sshll.u32 %s2683_s13, 4  ;;  %s2688_s30 = int_to_ptr.hbm [resolvable:$true] %s2687_s30 }
  0x89   : > { %2848 = vmatmul.msk.f32.gmra.mxu0 %vm417_vm0, %v928_v61  ;;  %2852 = vmatmul.msk.f32.gmra.mxu1 %vm417_vm0, %v928_v61  ;;  %s3235_s25 = sshra.s32 %s2688_s30, 4  ;;  %s3236_s25 = int_to_ptr.hbm [resolvable:$true] %s3235_s25 }
  0x8a   : > { %1316 = vmatpush.msrb.mxu0 %v2907_v25  ;;  %1345 = vmatpush.msrb.mxu1 %v2908_v26  ;;  %s3237_s0 = scalar_lea.hbm %s3236_s25, 1  ;;  %p3242_p0 = scmp.lt.s32.totalorder %s3236_s25, %s4888_s11 }
  0x8b   : > { %p3238_p11 = scmp.ne.s32.totalorder %s3236_s25, %s3237_s0 }
  0x8d   : > { %p3239_p12 = pnand %p3238_p11, %p3386_p5 }
  0x8e   : > { %2865 = vmatmul.msk.f32.gmra.mxu2 %vm417_vm0, %v1020_v0  ;;  %2869 = vmatmul.msk.f32.gmra.mxu3 %vm417_vm0, %v1020_v0 }
  0x8f   : > { %p3240_p13 = pneg %p3239_p12 }
  0x91   : > { %2849 = vmatmul.msk.f32.gmra.mxu0 %vm417_vm0, %v930_v1  ;;  %2853 = vmatmul.msk.f32.gmra.mxu1 %vm417_vm0, %v930_v1 }
  0x96   : > { %2866 = vmatmul.msk.f32.gmra.mxu2 %vm417_vm0, %v1019_v62  ;;  %2870 = vmatmul.msk.f32.gmra.mxu3 %vm417_vm0, %v1019_v62  ;;  %v2945_v62 = vld [vmem:[%s4878_s1 + $0x330] sm:$0xff] }
  0x99   : > { %2850 = vmatmul.msk.f32.gmra.mxu0 %vm417_vm0, %v929_v63  ;;  %2854 = vmatmul.msk.f32.gmra.mxu1 %vm417_vm0, %v929_v63  ;;  %v2946_v63 = vld [vmem:[%s4878_s1 + $0x338] sm:$0xff] }
  0x9e   : > { %v443_v21 = vpop.f32.mrf.mxu0  ;;  %v472_v22 = vpop.f32.mrf.mxu1  ;;  %2895 = vmatmul.msk.f32.vlgmr.msra.gmra.mxu2 %vm417_vm0, %v1196_v15  ;;  %2899 = vmatmul.msk.f32.vlgmr.msra.gmra.mxu3 %vm417_vm0, %v1196_v15  ;;  %v2939_v15 = vld [vmem:[%s4878_s1 + $0x300] sm:$0xff] }
  0x9f   : > { %1583 = vmatpush.msra.mxu2 %v2961_v54  ;;  %1612 = vmatpush.msra.mxu3 %v2962_v55 }
  0xa1   : > { %v509_v27 = vpop.f32.mrf.mxu2  ;;  %v538_v28 = vpop.f32.mrf.mxu3  ;;  %2879 = vmatmul.msk.f32.vlgmr.msra.gmra.mxu0 %vm417_vm0, %v1106_v23  ;;  %2883 = vmatmul.msk.f32.vlgmr.msra.gmra.mxu1 %vm417_vm0, %v1106_v23  ;;  %v1381_v23 = vrot.slane %v3965_v20, 1 }
  0xa2   : > { %v3853_v29 = vadd.f32 %v509_v27, %v443_v21  ;;  %v3855_v30 = vadd.f32 %v538_v28, %v472_v22  ;;  %1584 = vmatpush.msra.mxu2 %v2959_v58  ;;  %1613 = vmatpush.msra.mxu3 %v2960_v59  ;;  %v2971_v58 = vld [vmem:[%s4878_s1 + $0x380] sm:$0xff]  ;;  %v2972_v59 = vld [vmem:[%s4878_s1 + $0x388] sm:$0xff] }
  0xa3   : > { %1493 = vmatpush.msra.mxu0 %v2945_v62  ;;  %1522 = vmatpush.msra.mxu1 %v2946_v63  ;;  %v1382_v26 = vsel %vm409_vm1, %v1379_v14, %v1381_v23  ;;  %v1469_v62 = vrot.slane %v3928_v7, 2 }
  0xa4   : > { %1585 = vmatpush.msra.mxu2 %v2957_v2  ;;  %1614 = vmatpush.msra.mxu3 %v2958_v3 }
  0xa5   : > { %1494 = vmatpush.msra.mxu0 %v2943_v4  ;;  %1523 = vmatpush.msra.mxu1 %v2944_v6 }
  0xa6   : > { %v446_v33 = vpop.f32.mrf.mxu0  ;;  %v475_v36 = vpop.f32.mrf.mxu1  ;;  %2896 = vmatmul.msk.f32.gmra.mxu2 %vm417_vm0, %v1198_v32  ;;  %2900 = vmatmul.msk.f32.gmra.mxu3 %vm417_vm0, %v1198_v32 }
  0xa7   : > { %1586 = vmatpush.msra.mxu2 %v2955_v8  ;;  %1615 = vmatpush.msra.mxu3 %v2956_v9  ;;  %v1471_v9 = vrot.slane %v3965_v20, 2 }
  0xa8   : > { %1495 = vmatpush.msra.mxu0 %v2941_v10  ;;  %1524 = vmatpush.msra.mxu1 %v2942_v11 }
  0xa9   : > { %v512_v39 = vpop.f32.mrf.mxu2  ;;  %v541_v40 = vpop.f32.mrf.mxu3  ;;  %2880 = vmatmul.msk.f32.gmra.mxu0 %vm417_vm0, %v1108_v37  ;;  %2884 = vmatmul.msk.f32.gmra.mxu1 %vm417_vm0, %v1108_v37  ;;  %v1556_v37 = vrot.slane %v3881_v35, 3 }
  0xaa   : > { %v3865_v34 = vadd.f32 %v512_v39, %v446_v33  ;;  %v3867_v41 = vadd.f32 %v541_v40, %v475_v36  ;;  %1496 = vmatpush.msra.mxu0 %v2939_v15  ;;  %1525 = vmatpush.msra.mxu1 %v2940_v16  ;;  %v1472_v15 = vsel %vm559_vm3, %v1469_v62, %v1471_v9 }
  0xae   : > { %v449_v44 = vpop.f32.mrf.mxu0  ;;  %v478_v45 = vpop.f32.mrf.mxu1  ;;  %2897 = vmatmul.msk.f32.gmra.mxu2 %vm417_vm0, %v1200_v43  ;;  %2901 = vmatmul.msk.f32.gmra.mxu3 %vm417_vm0, %v1200_v43  ;;  %v2978_v43 = vld [vmem:[%s4878_s1 + $0x3b8] sm:$0xff] }
  0xb1   : > { %v515_v47 = vpop.f32.mrf.mxu2  ;;  %v544_v48 = vpop.f32.mrf.mxu3  ;;  %2881 = vmatmul.msk.f32.gmra.mxu0 %vm417_vm0, %v1110_v46  ;;  %2885 = vmatmul.msk.f32.gmra.mxu1 %vm417_vm0, %v1110_v46  ;;  %v2975_v46 = vld [vmem:[%s4878_s1 + $0x3a0] sm:$0xff] }
  0xb2   : > { %v3876_v49 = vadd.f32 %v515_v47, %v449_v44  ;;  %v3878_v50 = vadd.f32 %v544_v48, %v478_v45  ;;  %v1466_v44 = vrot.slane %v3881_v35, 2  ;;  %v1467_v45 = vrot.slane %v3884_v51, 2  ;;  %v2976_v47 = vld [vmem:[%s4878_s1 + $0x3a8] sm:$0xff] }
  0xb4   : > { %v1468_v56 = vsel %vm559_vm3, %v1466_v44, %v1467_v45  ;;  %v1470_v4 = vsel %vm559_vm3, %v1467_v45, %v1469_v62 }
  0xb6   : > { %v452_v52 = vpop.f32.mrf.mxu0  ;;  %v481_v53 = vpop.f32.mrf.mxu1  ;;  %2898 = vmatmul.msk.f32.gmra.mxu2 %vm417_vm0, %v1199_v38  ;;  %2902 = vmatmul.msk.f32.gmra.mxu3 %vm417_vm0, %v1199_v38  ;;  %v1557_v38 = vrot.slane %v3884_v51, 3 }
  0xb8   : > { %v1558_v48 = vsel %vm650_vm2, %v1556_v37, %v1557_v38  ;;  %v1560_v63 = vsel %vm650_vm2, %v1557_v38, %v1559_v57 }
  0xb9   : > { %v518_v60 = vpop.f32.mrf.mxu2  ;;  %v547_v61 = vpop.f32.mrf.mxu3  ;;  %2882 = vmatmul.msk.f32.gmra.mxu0 %vm417_vm0, %v1109_v42  ;;  %2886 = vmatmul.msk.f32.gmra.mxu1 %vm417_vm0, %v1109_v42  ;;  %v2977_v42 = vld [vmem:[%s4878_s1 + $0x3b0] sm:$0xff] }
  0xba   : > { %v3910_v0 = vadd.f32 %v518_v60, %v452_v52  ;;  %v3912_v1 = vadd.f32 %v547_v61, %v481_v53  ;;  %v2973_v52 = vld [vmem:[%s4878_s1 + $0x390] sm:$0xff]  ;;  %v2974_v53 = vld [vmem:[%s4878_s1 + $0x398] sm:$0xff] }
  0xbe   : > { %v3942_v12 = vpop.f32.mrf.mxu0  ;;  %v3944_v13 = vpop.f32.mrf.mxu1  ;;  %2931 = vmatmul.msk.f32.vlgmr.msrb.gmra.mxu2 %vm417_vm0, %v1378_v5  ;;  %2935 = vmatmul.msk.f32.vlgmr.msrb.gmra.mxu3 %vm417_vm0, %v1378_v5  ;;  %v1561_v5 = vrot.slane %v3965_v20, 3 }
  0xc0   : > { %v1562_v10 = vsel %vm650_vm2, %v1559_v57, %v1561_v5 }
  0xc1   : > { %v3955_v17 = vpop.f32.mrf.mxu2  ;;  %v3957_v18 = vpop.f32.mrf.mxu3  ;;  %2915 = vmatmul.msk.f32.vlgmr.msrb.gmra.mxu0 %vm417_vm0, %v3881_v35  ;;  %2919 = vmatmul.msk.f32.vlgmr.msrb.gmra.mxu1 %vm417_vm0, %v3881_v35 }
  0xc2   : > { %1673 = vmatpush.msrb.mxu0 %v2977_v42  ;;  %1702 = vmatpush.msrb.mxu1 %v2978_v43  ;;  %v1646_v42 = vrot.slane %v3881_v35, 4  ;;  %v1647_v43 = vrot.slane %v3884_v51, 4 }
  0xc4   : > { %1674 = vmatpush.msrb.mxu0 %v2975_v46  ;;  %1703 = vmatpush.msrb.mxu1 %v2976_v47  ;;  %v1648_v46 = vsel %vm741_vm4, %v1646_v42, %v1647_v43 }
  0xc6   : > { %v3967_v21 = vpop.f32.mrf.mxu0  ;;  %v3969_v22 = vpop.f32.mrf.mxu1  ;;  %2932 = vmatmul.msk.f32.gmra.mxu2 %vm417_vm0, %v1380_v19  ;;  %2936 = vmatmul.msk.f32.gmra.mxu3 %vm417_vm0, %v1380_v19 }
  0xc7   : > { %1675 = vmatpush.msrb.mxu0 %v2973_v52  ;;  %1704 = vmatpush.msrb.mxu1 %v2974_v53  ;;  %v1649_v52 = vrot.slane %v3928_v7, 4 }
  0xc9   : > { %v3974_v24 = vpop.f32.mrf.mxu2  ;;  %v3976_v25 = vpop.f32.mrf.mxu3  ;;  %2916 = vmatmul.msk.f32.gmra.mxu0 %vm417_vm0, %v3884_v51  ;;  %2920 = vmatmul.msk.f32.gmra.mxu1 %vm417_vm0, %v3884_v51  ;;  %v1650_v35 = vsel %vm741_vm4, %v1647_v43, %v1649_v52 }
  0xca   : > { %1676 = vmatpush.msrb.mxu0 %v2971_v58  ;;  %1705 = vmatpush.msrb.mxu1 %v2972_v59 }
  0xce   : > { %v3983_v27 = vpop.f32.mrf.mxu0  ;;  %v3985_v28 = vpop.f32.mrf.mxu1  ;;  %2933 = vmatmul.msk.f32.gmra.mxu2 %vm417_vm0, %v1382_v26  ;;  %2937 = vmatmul.msk.f32.gmra.mxu3 %vm417_vm0, %v1382_v26 }
  0xcf   : > { %v637_v53 = vadd.f32 %v3983_v27, %v3876_v49  ;;  %v633_v49 = vadd.f32 %v3942_v12, %v3853_v29  ;;  %v634_v27 = vadd.f32 %v3944_v13, %v3855_v30  ;;  %v635_v13 = vadd.f32 %v3967_v21, %v3865_v34 }
  0xd1   : > { %v3989_v31 = vpop.f32.mrf.mxu2  ;;  %v3991_v32 = vpop.f32.mrf.mxu3  ;;  %2917 = vmatmul.msk.f32.gmra.mxu0 %vm417_vm0, %v3928_v7  ;;  %2921 = vmatmul.msk.f32.gmra.mxu1 %vm417_vm0, %v3928_v7 }
  0xd2   : > { %v728_v51 = vadd.f32 %v3989_v31, %v637_v53 }
  0xd6   : > { %v3997_v33 = vpop.f32.mrf.mxu0  ;;  %v3999_v36 = vpop.f32.mrf.mxu1  ;;  %2934 = vmatmul.msk.f32.gmra.mxu2 %vm417_vm0, %v1381_v23  ;;  %2938 = vmatmul.msk.f32.gmra.mxu3 %vm417_vm0, %v1381_v23 }
  0xd7   : > { %v639_v7 = vadd.f32 %v3997_v33, %v3910_v0 }
  0xd9   : > { %v4005_v39 = vpop.f32.mrf.mxu2  ;;  %v4007_v40 = vpop.f32.mrf.mxu3  ;;  %2918 = vmatmul.msk.f32.gmra.mxu0 %vm417_vm0, %v3965_v20  ;;  %2922 = vmatmul.msk.f32.gmra.mxu1 %vm417_vm0, %v3965_v20 }
  0xde   : > { %v4034_v54 = vpop.f32.mrf.mxu0  ;;  %v4036_v55 = vpop.f32.mrf.mxu1  ;;  %2963 = vmatmul.msk.f32.vlgmr.msra.gmra.mxu2 %vm417_vm0, %v1558_v48  ;;  %2967 = vmatmul.msk.f32.vlgmr.msra.gmra.mxu3 %vm417_vm0, %v1558_v48 }
  0xe1   : > { %v4048_v60 = vpop.f32.mrf.mxu2  ;;  %v4050_v61 = vpop.f32.mrf.mxu3  ;;  %2947 = vmatmul.msk.f32.vlgmr.msra.gmra.mxu0 %vm417_vm0, %v1468_v56  ;;  %2951 = vmatmul.msk.f32.vlgmr.msra.gmra.mxu1 %vm417_vm0, %v1468_v56 }
  0xe6   : > { %v4056_v2 = vpop.f32.mrf.mxu0  ;;  %v4058_v3 = vpop.f32.mrf.mxu1  ;;  %2964 = vmatmul.msk.f32.gmra.mxu2 %vm417_vm0, %v1560_v63  ;;  %2968 = vmatmul.msk.f32.gmra.mxu3 %vm417_vm0, %v1560_v63  ;;  %v1651_v63 = vrot.slane %v3965_v20, 4  ;;  %v725_v20 = vadd.f32 %v3957_v18, %v634_v27 }
  0xe8   : > { %v816_v12 = vadd.f32 %v4036_v55, %v725_v20 }
  0xe9   : > { %v4064_v6 = vpop.f32.mrf.mxu2  ;;  %v4066_v8 = vpop.f32.mrf.mxu3  ;;  %2948 = vmatmul.msk.f32.gmra.mxu0 %vm417_vm0, %v1470_v4  ;;  %2952 = vmatmul.msk.f32.gmra.mxu1 %vm417_vm0, %v1470_v4 }
  0xea   : > { %v908_v43 = vadd.f32 %v4050_v61, %v816_v12 }
  0xee   : > { %v780_v11 = vpop.f32.mrf.mxu0  ;;  %v4072_v14 = vpop.f32.mrf.mxu1  ;;  %2965 = vmatmul.msk.f32.gmra.mxu2 %vm417_vm0, %v1562_v10  ;;  %2969 = vmatmul.msk.f32.gmra.mxu3 %vm417_vm0, %v1562_v10  ;;  %v730_v10 = vadd.f32 %v4005_v39, %v639_v7 }
  0xef   : > { %v819_v58 = vadd.f32 %v780_v11, %v728_v51 }
  0xf1   : > { %v872_v16 = vpop.f32.mrf.mxu2  ;;  %v4077_v19 = vpop.f32.mrf.mxu3  ;;  %2949 = vmatmul.msk.f32.gmra.mxu0 %vm417_vm0, %v1472_v15  ;;  %2953 = vmatmul.msk.f32.gmra.mxu1 %vm417_vm0, %v1472_v15  ;;  %v724_v15 = vadd.f32 %v3955_v17, %v633_v49  ;;  %v636_v17 = vadd.f32 %v3969_v22, %v3867_v41  ;;  %v638_v22 = vadd.f32 %v3985_v28, %v3878_v50 }
  0xf2   : > { %v911_v4 = vadd.f32 %v872_v16, %v819_v58  ;;  %v640_v50 = vadd.f32 %v3999_v36, %v3912_v1 }
  0xf3   : > { %v815_v30 = vadd.f32 %v4034_v54, %v724_v15  ;;  %v727_v54 = vadd.f32 %v3976_v25, %v636_v17 }
  0xf5   : > { %v818_v21 = vadd.f32 %v4058_v3, %v727_v54 }
  0xf6   : > { %v783_v23 = vpop.f32.mrf.mxu0  ;;  %v4081_v26 = vpop.f32.mrf.mxu1  ;;  %2966 = vmatmul.msk.f32.gmra.mxu2 %vm417_vm0, %v1561_v5  ;;  %2970 = vmatmul.msk.f32.gmra.mxu3 %vm417_vm0, %v1561_v5 }
  0xf7   : > { %v821_v42 = vadd.f32 %v783_v23, %v730_v10  ;;  %v907_v23 = vadd.f32 %v4048_v60, %v815_v30 }
  0xf9   : > { %v875_v37 = vpop.f32.mrf.mxu2  ;;  %v4085_v38 = vpop.f32.mrf.mxu3  ;;  %2950 = vmatmul.msk.f32.gmra.mxu0 %vm417_vm0, %v1471_v9  ;;  %2954 = vmatmul.msk.f32.gmra.mxu1 %vm417_vm0, %v1471_v9  ;;  %v1652_v9 = vsel %vm741_vm4, %v1649_v52, %v1651_v63  ;;  %v726_v52 = vadd.f32 %v3974_v24, %v635_v13 }
  0xfa   : > { %v913_v39 = vadd.f32 %v875_v37, %v821_v42 }
  0xfb   : > { %v817_v41 = vadd.f32 %v4056_v2, %v726_v52 }
  0xfd   : > { %v909_v37 = vadd.f32 %v4064_v6, %v817_v41 }
  0xfe   : > { %v956_v44 = vpop.f32.mrf.mxu0  ;;  %v985_v45 = vpop.f32.mrf.mxu1 }
  0xff   : > { %v997_v53 = vadd.f32 %v956_v44, %v907_v23  ;;  %v998_v55 = vadd.f32 %v985_v45, %v908_v43  ;;  %v910_v44 = vadd.f32 %v4066_v8, %v818_v21 }
 0x101   : > { %v1046_v47 = vpop.f32.mrf.mxu2  ;;  %v1075_v48 = vpop.f32.mrf.mxu3  ;;  %2979 = vmatmul.msk.f32.vlgmr.msrb.gmra.mxu0 %vm417_vm0, %v1648_v46  ;;  %2983 = vmatmul.msk.f32.vlgmr.msrb.gmra.mxu1 %vm417_vm0, %v1648_v46 }
 0x102   : > { %v1087_v60 = vadd.f32 %v1046_v47, %v997_v53  ;;  %v1088_v24 = vadd.f32 %v1075_v48, %v998_v55 }
 0x106   : > { %v959_v56 = vpop.f32.mrf.mxu0  ;;  %v988_v57 = vpop.f32.mrf.mxu1 }
 0x107   : > { %v999_v7 = vadd.f32 %v959_v56, %v909_v37  ;;  %v1000_v49 = vadd.f32 %v988_v57, %v910_v44 }
 0x109   : > { %v1049_v59 = vpop.f32.mrf.mxu2  ;;  %v1078_v62 = vpop.f32.mrf.mxu3  ;;  %2980 = vmatmul.msk.f32.gmra.mxu0 %vm417_vm0, %v1650_v35  ;;  %2984 = vmatmul.msk.f32.gmra.mxu1 %vm417_vm0, %v1650_v35 }
 0x10a   : > { %v1089_v28 = vadd.f32 %v1049_v59, %v999_v7  ;;  %v1090_v47 = vadd.f32 %v1078_v62, %v1000_v49 }
 0x10e   : > { %v962_v31 = vpop.f32.mrf.mxu0  ;;  %v991_v5 = vpop.f32.mrf.mxu1 }
 0x10f   : > { %v1001_v11 = vadd.f32 %v962_v31, %v911_v4 }
 0x111   : > { %v1052_v0 = vpop.f32.mrf.mxu2  ;;  %v1081_v33 = vpop.f32.mrf.mxu3  ;;  %2981 = vmatmul.msk.f32.gmra.mxu0 %vm417_vm0, %v1652_v9  ;;  %2985 = vmatmul.msk.f32.gmra.mxu1 %vm417_vm0, %v1652_v9 }
 0x112   : > { %v1091_v29 = vadd.f32 %v1052_v0, %v1001_v11 }
 0x116   : > { %v965_v18 = vpop.f32.mrf.mxu0  ;;  %v994_v16 = vpop.f32.mrf.mxu1 }
 0x117   : > { %v1003_v46 = vadd.f32 %v965_v18, %v913_v39 }
 0x119   : > { %v1055_v35 = vpop.f32.mrf.mxu2  ;;  %v1084_v51 = vpop.f32.mrf.mxu3  ;;  %2982 = vmatmul.msk.f32.gmra.mxu0 %vm417_vm0, %v1651_v63  ;;  %2986 = vmatmul.msk.f32.gmra.mxu1 %vm417_vm0, %v1651_v63  ;;  %v729_v63 = vadd.f32 %v3991_v32, %v638_v22  ;;  %v731_v32 = vadd.f32 %v4007_v40, %v640_v50  ;;  %vm2672_vm0 = vcmask 73728  }
 0x11a   : > { %v1093_v34 = vadd.f32 %v1055_v35, %v1003_v46 }
 0x11b   : > { %v820_v4 = vadd.f32 %v4072_v14, %v729_v63  ;;  %v822_v14 = vadd.f32 %v4081_v26, %v731_v32 }
 0x11d   : > { %v912_v8 = vadd.f32 %v4077_v19, %v820_v4  ;;  %v914_v36 = vadd.f32 %v4085_v38, %v822_v14 }
 0x11e   : > { %v1136_v61 = vpop.f32.mrf.mxu0  ;;  %v1165_v25 = vpop.f32.mrf.mxu1 }
 0x11f   : > { %v1177_v45 = vadd.f32 %v1136_v61, %v1087_v60  ;;  %v1178_v58 = vadd.f32 %v1165_v25, %v1088_v24  ;;  %v1002_v56 = vadd.f32 %v991_v5, %v912_v8  ;;  %v1004_v0 = vadd.f32 %v994_v16, %v914_v36 }
 0x121   : > { %v1226_v2 = vpop.f32.mrf.mxu2  ;;  %v1255_v27 = vpop.f32.mrf.mxu3  ;;  %v1092_v20 = vadd.f32 %v1081_v33, %v1002_v56  ;;  %v1094_v40 = vadd.f32 %v1084_v51, %v1004_v0 }
 0x122   : > { %v1267_v3 = vadd.f32 %v1226_v2, %v1177_v45  ;;  %v1268_v23 = vadd.f32 %v1255_v27, %v1178_v58 }
 0x126   : > { %v1139_v48 = vpop.f32.mrf.mxu0  ;;  %v1168_v6 = vpop.f32.mrf.mxu1 }
 0x127   : > { %v1179_v31 = vadd.f32 %v1139_v48, %v1089_v28  ;;  %v1180_v9 = vadd.f32 %v1168_v6, %v1090_v47 }
 0x129   : > { %v1229_v57 = vpop.f32.mrf.mxu2  ;;  %v1258_v10 = vpop.f32.mrf.mxu3 }
 0x12a   : > { %v1269_v11 = vadd.f32 %v1229_v57, %v1179_v31  ;;  %v1270_v15 = vadd.f32 %v1258_v10, %v1180_v9  ;;  %v1728_v57 = vlaneseq }
 0x12e   : > { %v1142_v42 = vpop.f32.mrf.mxu0  ;;  %v1171_v1 = vpop.f32.mrf.mxu1 }
 0x12f   : > { %v1181_v59 = vadd.f32 %v1142_v42, %v1091_v29  ;;  %v1182_v62 = vadd.f32 %v1171_v1, %v1092_v20 }
 0x131   : > { %v1232_v19 = vpop.f32.mrf.mxu2  ;;  %v1261_v30 = vpop.f32.mrf.mxu3 }
 0x132   : > { %v1271_v12 = vadd.f32 %v1232_v19, %v1181_v59  ;;  %v1272_v13 = vadd.f32 %v1261_v30, %v1182_v62 }
 0x136   : > { %v1145_v5 = vpop.f32.mrf.mxu0  ;;  %v1174_v17 = vpop.f32.mrf.mxu1 }
 0x137   : > { %v1183_v39 = vadd.f32 %v1145_v5, %v1093_v34  ;;  %v1184_v18 = vadd.f32 %v1174_v17, %v1094_v40 }
 0x139   : > { %v1235_v52 = vpop.f32.mrf.mxu2  ;;  %v1264_v53 = vpop.f32.mrf.mxu3 }
 0x13a   : > { %v1273_v56 = vadd.f32 %v1235_v52, %v1183_v39  ;;  %v1274_v42 = vadd.f32 %v1264_v53, %v1184_v18 }
 0x13e   : > { %v1318_v43 = vpop.f32.mrf.mxu0  ;;  %v1347_v26 = vpop.f32.mrf.mxu1 }
 0x13f   : > { %v1359_v33 = vadd.f32 %v1318_v43, %v1267_v3  ;;  %v4140_v46 = vadd.f32 %v1347_v26, %v1268_v23  ;;  %v1732_v23 = vand.u32 127, %v1728_v57 }
 0x141   : > { %v1408_v55 = vpop.f32.mrf.mxu2  ;;  %v4142_v22 = vpop.f32.mrf.mxu3 }
 0x146   : > { %v1321_v38 = vpop.f32.mrf.mxu0  ;;  %v1350_v29 = vpop.f32.mrf.mxu1 }
 0x147   : > { %v1361_v54 = vadd.f32 %v1321_v38, %v1269_v11  ;;  %v1362_v16 = vadd.f32 %v1350_v29, %v1270_v15  ;;  %v1729_v15 = vshrl.u32 %v1728_v57, 7 }
 0x149   : > { %v1411_v34 = vpop.f32.mrf.mxu2  ;;  %v1440_v61 = vpop.f32.mrf.mxu3  ;;  %v1733_v19 = vmul.u32 2, %v1729_v15  ;;  %v1730_v43 = vadd.s32 8, %v1729_v15 }
 0x14a   : > { %v1451_v30 = vadd.f32 %v1411_v34, %v1361_v54  ;;  %v1452_v18 = vadd.f32 %v1440_v61, %v1362_v16  ;;  %v1450_v16 = vadd.f32 %v4142_v22, %v4140_v46 }
 0x14b   : > { %v1741_v26 = vadd.s32 1, %v1733_v19  ;;  %vm4156_vm5 = vcmp.eq.s32.totalorder %v1732_v23, %v1733_v19  ;;  %v1734_v54 = vmul.u32 2, %v1730_v43  ;;  %v1904_v19 = vld [vmem:[%s4880_s3 + $0x70] sm:$0xff]  ;;  %v1901_v43 = vld [vmem:[%s4880_s3 + $0x58] sm:$0xff] }
 0x14d   : > { %vm1743_vm6 = vcmp.eq.s32.totalorder %v1732_v23, %v1741_v26  ;;  %vm1736_vm9 = vcmp.eq.s32.totalorder %v1732_v23, %v1734_v54  ;;  %v3017_v26 = vld [vmem:[%s4880_s3 + $0x120] sm:$0xff] }
 0x14e   : > { %v1324_v35 = vpop.f32.mrf.mxu0  ;;  %v1353_v41 = vpop.f32.mrf.mxu1 }
 0x14f   : > { %v1363_v51 = vadd.f32 %v1324_v35, %v1271_v12  ;;  %v1364_v21 = vadd.f32 %v1353_v41, %v1272_v13  ;;  %v1449_v13 = vadd.f32 %v1408_v55, %v1359_v33  ;;  %v1894_v33 = vld [vmem:[%s4880_s3 + $0x20] sm:$0xff] }
 0x151   : > { %v1414_v44 = vpop.f32.mrf.mxu2  ;;  %v1443_v63 = vpop.f32.mrf.mxu3 }
 0x152   : > { %v1453_v1 = vadd.f32 %v1414_v44, %v1363_v51  ;;  %v1454_v35 = vadd.f32 %v1443_v63, %v1364_v21 }
 0x156   : > { %v1327_v60 = vpop.f32.mrf.mxu0  ;;  %v1356_v24 = vpop.f32.mrf.mxu1 }
 0x157   : > { %v1365_v10 = vadd.f32 %v1327_v60, %v1273_v56  ;;  %v1366_v59 = vadd.f32 %v1356_v24, %v1274_v42  ;;  %v1908_v42 = vld [vmem:[%s4880_s3 + $0x90] sm:$0xff] }
 0x159   : > { %v1417_v7 = vpop.f32.mrf.mxu2  ;;  %v1446_v27 = vpop.f32.mrf.mxu3 }
 0x15a   : > { %v1455_v14 = vadd.f32 %v1417_v7, %v1365_v10  ;;  %v1456_v17 = vadd.f32 %v1446_v27, %v1366_v59  ;;  %v1907_v59 = vld [vmem:[%s4880_s3 + $0x88] sm:$0xff] }
 0x15e   : > { %v1498_v25 = vpop.f32.mrf.mxu0  ;;  %v4144_v37 = vpop.f32.mrf.mxu1 }
 0x15f   : > { %v1539_v52 = vadd.f32 %v1498_v25, %v1449_v13  ;;  %v3022_v13 = vld [vmem:[%s4880_s3 + $0x148] sm:$0xff] }
 0x161   : > { %v1588_v3 = vpop.f32.mrf.mxu2  ;;  %v4146_v28 = vpop.f32.mrf.mxu3 }
 0x162   : > { %v1629_v55 = vadd.f32 %v1588_v3, %v1539_v52  ;;  %v3018_v52 = vld [vmem:[%s4880_s3 + $0x128] sm:$0xff] }
 0x166   : > { %v1501_v45 = vpop.f32.mrf.mxu0  ;;  %v1530_v58 = vpop.f32.mrf.mxu1 }
 0x167   : > { %v1541_v40 = vadd.f32 %v1501_v45, %v1451_v30  ;;  %v1542_v21 = vadd.f32 %v1530_v58, %v1452_v18  ;;  %v3285_v45 = vmov 0.0   ;;  %v1905_v30 = vld [vmem:[%s4880_s3 + $0x78] sm:$0xff]  ;;  %v3015_v18 = vld [vmem:[%s4880_s3 + $0x110] sm:$0xff] }
 0x168   : > { %v4164_v63 = vsel %vm4156_vm5, 1.0, %v3285_v45  ;;  %v4167_v7 = vsel %vm1743_vm6, 1.0, %v3285_v45 }
 0x169   : > { %v1591_v47 = vpop.f32.mrf.mxu2  ;;  %v4150_v8 = vpop.f32.mrf.mxu3 }
 0x16a   : > { %v1631_v41 = vadd.f32 %v1591_v47, %v1541_v40  ;;  %v1632_v22 = vadd.f32 %v4150_v8, %v1542_v21  ;;  %v2988_v47 = vsel %vm1736_vm9, 1.0, %v3285_v45  ;;  %v1902_v40 = vld [vmem:[%s4880_s3 + $0x60] sm:$0xff] }
 0x16b   : > { %v3009_v21 = vld [vmem:[%s4880_s3 + $0xe0] sm:$0xff] }
 0x16e   : > { %v1504_v49 = vpop.f32.mrf.mxu0  ;;  %v1533_v2 = vpop.f32.mrf.mxu1 }
 0x16f   : > { %v1543_v12 = vadd.f32 %v1504_v49, %v1453_v1  ;;  %v1544_v34 = vadd.f32 %v1533_v2, %v1454_v35  ;;  %v1742_v49 = vadd.s32 1, %v1734_v54  ;;  %v1540_v2 = vadd.f32 %v4144_v37, %v1450_v16  ;;  %v1909_v1 = vld [vmem:[%s4880_s3 + $0x98] sm:$0xff]  ;;  %v1896_v35 = vld [vmem:[%s4880_s3 + $0x30] sm:$0xff]  ;;  %v1895_v54 = vld [vmem:[%s4880_s3 + $0x28] sm:$0xff] }
 0x170   : > { %v1893_v16 = vld [vmem:[%s4880_s3 + $0x18] sm:$0xff] }
 0x171   : > { %v1594_v9 = vpop.f32.mrf.mxu2  ;;  %v1623_v20 = vpop.f32.mrf.mxu3  ;;  %vm1744_vm8 = vcmp.eq.s32.totalorder %v1732_v23, %v1742_v49  ;;  %v1630_v3 = vadd.f32 %v4146_v28, %v1540_v2  ;;  %v1900_v23 = vld [vmem:[%s4880_s3 + $0x50] sm:$0xff]  ;;  %v3086_v49 = vld [vmem:[%s4880_s3 + $0x2b8] sm:$0xf] }
 0x172   : > { %v1633_v38 = vadd.f32 %v1594_v9, %v1543_v12  ;;  %v1634_v27 = vadd.f32 %v1623_v20, %v1544_v34  ;;  %v1911_v20 = vld [vmem:[%s4880_s3 + $0xa8] sm:$0xf]  ;;  %v3021_v12 = vld [vmem:[%s4880_s3 + $0x140] sm:$0xff]  ;;  %v3012_v34 = vld [vmem:[%s4880_s3 + $0xf8] sm:$0xff] }
 0x173   : > { %v3007_v2 = vld [vmem:[%s4880_s3 + $0xd0] sm:$0xff] }
 0x176   : > { %v1507_v4 = vpop.f32.mrf.mxu0  ;;  %v1536_v50 = vpop.f32.mrf.mxu1 }
 0x177   : > { %v1545_v36 = vadd.f32 %v1507_v4, %v1455_v14  ;;  %v1546_v53 = vadd.f32 %v1536_v50, %v1456_v17  ;;  %v2990_v50 = vsel %vm1744_vm8, 1.0, %v3285_v45  ;;  %v1910_v14 = vld [vmem:[%s4880_s3 + $0xa0] sm:$0xf]  ;;  %v3019_v17 = vld [vmem:[%s4880_s3 + $0x130] sm:$0xff] }
 0x178   : > { %v3085_v45 = vld [vmem:[%s4880_s3 + $0x2b0] sm:$0xf] }
 0x179   : > { %v1597_v62 = vpop.f32.mrf.mxu2  ;;  %v1626_v51 = vpop.f32.mrf.mxu3 }
 0x17a   : > { %v1635_v5 = vadd.f32 %v1597_v62, %v1545_v36  ;;  %v1636_v61 = vadd.f32 %v1626_v51, %v1546_v53  ;;  %v1906_v36 = vld [vmem:[%s4880_s3 + $0x80] sm:$0xff]  ;;  %v3023_v62 = vld [vmem:[%s4880_s3 + $0x150] sm:$0xf]  ;;  %v3016_v53 = vld [vmem:[%s4880_s3 + $0x118] sm:$0xff] }
 0x17b   : > { %3025 = vmatpush.msk.msra.mxu0 %vm741_vm4, %v3023_v62  ;;  %v3013_v51 = vld [vmem:[%s4880_s3 + $0x100] sm:$0xff] }
 0x17c   : > { %v3049_v62 = vld [vmem:[%s4880_s3 + $0x1c0] sm:$0xff] }
 0x17d   : > { %1957 = vmatpush.msra.mxu0 %v3021_v12  ;;  %v3047_v12 = vld [vmem:[%s4880_s3 + $0x1b0] sm:$0xff] }
 0x17e   : > { %v1678_v48 = vpop.f32.mrf.mxu0  ;;  %v4148_v6 = vpop.f32.mrf.mxu1 }
 0x17f   : > { %v1719_v44 = vadd.f32 %v1678_v48, %v1629_v55  ;;  %v1720_v4 = vadd.f32 %v4148_v6, %v1630_v3  ;;  %1958 = vmatpush.msra.mxu0 %v3019_v17  ;;  %v3011_v55 = vld [vmem:[%s4880_s3 + $0xf0] sm:$0xff]  ;;  %v3006_v3 = vld [vmem:[%s4880_s3 + $0xc8] sm:$0xff]  ;;  %v3045_v17 = vld [vmem:[%s4880_s3 + $0x1a0] sm:$0xff] }
 0x181   : > { %1959 = vmatpush.msra.mxu0 %v3017_v26  ;;  %v3043_v26 = vld [vmem:[%s4880_s3 + $0x190] sm:$0xff] }
 0x183   : > { %1960 = vmatpush.msra.mxu0 %v3015_v18 }
 0x185   : > { %1961 = vmatpush.msra.mxu0 %v3013_v51  ;;  %v3040_v51 = vld [vmem:[%s4880_s3 + $0x178] sm:$0xff] }
 0x186   : > { %v1681_v31 = vpop.f32.mrf.mxu0  ;;  %v4152_v32 = vpop.f32.mrf.mxu1 }
 0x187   : > { %v1721_v24 = vadd.f32 %v1681_v31, %v1631_v41  ;;  %v1722_v37 = vadd.f32 %v4152_v32, %v1632_v22  ;;  %v1897_v41 = vld [vmem:[%s4880_s3 + $0x38] sm:$0xff]  ;;  %1962 = vmatpush.msra.mxu0 %v3011_v55  ;;  %v3084_v22 = vld [vmem:[%s4880_s3 + $0x2a8] sm:$0xff]  ;;  %v3219_v55 = vld [vmem:[%s4879_s2] ss:$0 sm:$0xff] }
 0x189   : > { %1963 = vmatpush.msra.mxu0 %v3009_v21 }
 0x18b   : > { %1964 = vmatpush.msra.mxu0 %v3007_v2 }
 0x18e   : > { %v1684_v11 = vpop.f32.mrf.mxu0  ;;  %v1713_v0 = vpop.f32.mrf.mxu1 }
 0x18f   : > { %v1723_v60 = vadd.f32 %v1684_v11, %v1633_v38  ;;  %v1724_v58 = vadd.f32 %v1713_v0, %v1634_v27  ;;  %v3024_v0 = vld [vmem:[%s4880_s3 + $0x158] sm:$0xf]  ;;  %v1898_v38 = vld [vmem:[%s4880_s3 + $0x40] sm:$0xff] }
 0x190   : > { %3028 = vmatpush.msk.msra.mxu1 %vm741_vm4, %v3024_v0  ;;  %v3008_v27 = vld [vmem:[%s4880_s3 + $0xd8] sm:$0xff]  ;;  %v3050_v0 = vld [vmem:[%s4880_s3 + $0x1c8] sm:$0xff] }
 0x192   : > { %1980 = vmatpush.msra.mxu1 %v3022_v13  ;;  %v3048_v13 = vld [vmem:[%s4880_s3 + $0x1b8] sm:$0xff] }
 0x196   : > { %v1687_v39 = vpop.f32.mrf.mxu0  ;;  %v1716_v25 = vpop.f32.mrf.mxu1 }
 0x197   : > { %v1725_v29 = vadd.f32 %v1687_v39, %v1635_v5  ;;  %v1726_v46 = vadd.f32 %v1716_v25, %v1636_v61  ;;  %v1903_v5 = vld [vmem:[%s4880_s3 + $0x68] sm:$0xff]  ;;  %v3020_v39 = vld [vmem:[%s4880_s3 + $0x138] sm:$0xff]  ;;  %v1890_v25 = vld [vmem:[%s4880_s3] sm:$0xff] }
 0x198   : > { %1981 = vmatpush.msra.mxu1 %v3020_v39  ;;  %v3010_v61 = vld [vmem:[%s4880_s3 + $0xe8] sm:$0xff] }
 0x199   : > { %2991 = vmatpush.msk.msrb.mxu3 %vm741_vm4, %v1725_v29  ;;  %2997 = vmatpush.msk.msrb.mxu2 %vm741_vm4, %v1725_v29  ;;  %v1899_v29 = vld [vmem:[%s4880_s3 + $0x48] sm:$0xff] }
 0x19a   : > { %1982 = vmatpush.msra.mxu1 %v3018_v52  ;;  %v3046_v39 = vld [vmem:[%s4880_s3 + $0x1a8] sm:$0xff]  ;;  %v3044_v52 = vld [vmem:[%s4880_s3 + $0x198] sm:$0xff] }
 0x19b   : > { %1775 = vmatpush.msrb.mxu3 %v1723_v60  ;;  %1827 = vmatpush.msrb.mxu2 %v1723_v60  ;;  %v3014_v60 = vld [vmem:[%s4880_s3 + $0x108] sm:$0xff] }
 0x19c   : > { %1983 = vmatpush.msra.mxu1 %v3016_v53  ;;  %v3041_v53 = vld [vmem:[%s4880_s3 + $0x180] sm:$0xff] }
 0x19d   : > { %1776 = vmatpush.msrb.mxu3 %v1721_v24  ;;  %1828 = vmatpush.msrb.mxu2 %v1721_v24  ;;  %v1892_v24 = vld [vmem:[%s4880_s3 + $0x10] sm:$0xff] }
 0x19e   : > { %1984 = vmatpush.msra.mxu1 %v3014_v60  ;;  %v3037_v60 = vld [vmem:[%s4880_s3 + $0x160] sm:$0xff] }
 0x19f   : > { %1777 = vmatpush.msrb.mxu3 %v1719_v44  ;;  %1829 = vmatpush.msrb.mxu2 %v1719_v44  ;;  %v1891_v44 = vld [vmem:[%s4880_s3 + $0x8] sm:$0xff] }
 0x1a0   : > { %2992 = vmatmul.msk.f32.vlgmr.msrb.gmra.mxu3 %vm1749_vm7, %v4164_v63  ;;  %2998 = vmatmul.msk.f32.vlgmr.msrb.gmra.mxu2 %vm1749_vm7, %v4167_v7 }
 0x1a1   : > { %2994 = vmatpush.msk.msra.mxu3 %vm741_vm4, %v1726_v46  ;;  %3031 = vmatpush.msk.msra.mxu2 %vm741_vm4, %v1910_v14  ;;  %v3075_v14 = vld [vmem:[%s4880_s3 + $0x260] sm:$0xff] }
 0x1a2   : > { %1985 = vmatpush.msra.mxu1 %v3012_v34 }
 0x1a3   : > { %1798 = vmatpush.msra.mxu3 %v1724_v58  ;;  %2013 = vmatpush.msra.mxu2 %v1908_v42  ;;  %v3051_v42 = vld [vmem:[%s4880_s3 + $0x1d0] sm:$0xff] }
 0x1a4   : > { %1986 = vmatpush.msra.mxu1 %v3010_v61 }
 0x1a5   : > { %1799 = vmatpush.msra.mxu3 %v1722_v37  ;;  %2014 = vmatpush.msra.mxu2 %v1906_v36  ;;  %v3073_v36 = vld [vmem:[%s4880_s3 + $0x250] sm:$0xff] }
 0x1a6   : > { %1987 = vmatpush.msra.mxu1 %v3008_v27 }
 0x1a7   : > { %1800 = vmatpush.msra.mxu3 %v1720_v4  ;;  %2015 = vmatpush.msra.mxu2 %v1904_v19  ;;  %v3071_v19 = vld [vmem:[%s4880_s3 + $0x240] sm:$0xff] }
 0x1a8   : > { %2999 = vmatmul.msk.f32.gmra.mxu2 %vm1749_vm7, %v2990_v50  ;;  %2993 = vmatmul.msk.f32.gmra.mxu3 %vm1749_vm7, %v2988_v47 }
 0x1a9   : > { %3000 = vmatpush.msk.msrb.mxu3 %vm741_vm4, %v1726_v46  ;;  %2016 = vmatpush.msra.mxu2 %v1902_v40  ;;  %v3083_v46 = vld [vmem:[%s4880_s3 + $0x2a0] sm:$0xff]  ;;  %v3069_v40 = vld [vmem:[%s4880_s3 + $0x230] sm:$0xff] }
 0x1aa   : > { %1988 = vmatpush.msra.mxu1 %v3006_v3  ;;  %v3111_v3 = vld [vmem:[%s4880_s3 + $0x350] sm:$0xff] }
 0x1ab   : > { %1850 = vmatpush.msrb.mxu3 %v1724_v58  ;;  %2017 = vmatpush.msra.mxu2 %v1900_v23  ;;  %v3005_v58 = vld [vmem:[%s4880_s3 + $0xc0] sm:$0xff] }
 0x1ac   : > { %1965 = vmatpush.msra.mxu0 %v3005_v58  ;;  %v3067_v23 = vld [vmem:[%s4880_s3 + $0x220] sm:$0xff] }
 0x1ad   : > { %1851 = vmatpush.msrb.mxu3 %v1722_v37  ;;  %2018 = vmatpush.msra.mxu2 %v1898_v38  ;;  %v3081_v37 = vld [vmem:[%s4880_s3 + $0x290] sm:$0xff] }
 0x1ae   : > { %v3065_v38 = vld [vmem:[%s4880_s3 + $0x210] sm:$0xff] }
 0x1af   : > { %1852 = vmatpush.msrb.mxu3 %v1720_v4  ;;  %2019 = vmatpush.msra.mxu2 %v1896_v35  ;;  %v3082_v4 = vld [vmem:[%s4880_s3 + $0x298] sm:$0xff]  ;;  %v3042_v35 = vld [vmem:[%s4880_s3 + $0x188] sm:$0xff] }
 0x1b0   : > { %2995 = vmatmul.msk.f32.vlgmr.msra.gmra.mxu3 %vm1749_vm7, %v4164_v63 }
 0x1b1   : > { %3034 = vmatpush.msk.msra.mxu3 %vm741_vm4, %v1911_v20  ;;  %2020 = vmatpush.msra.mxu2 %v1894_v33  ;;  %v3076_v20 = vld [vmem:[%s4880_s3 + $0x268] sm:$0xff] }
 0x1b2   : > { %v3038_v33 = vld [vmem:[%s4880_s3 + $0x168] sm:$0xff] }
 0x1b3   : > { %2036 = vmatpush.msra.mxu3 %v1909_v1  ;;  %2021 = vmatpush.msra.mxu2 %v1892_v24  ;;  %v3052_v1 = vld [vmem:[%s4880_s3 + $0x1d8] sm:$0xff] }
 0x1b5   : > { %2037 = vmatpush.msra.mxu3 %v1907_v59  ;;  %2022 = vmatpush.msra.mxu2 %v1890_v25  ;;  %v3074_v59 = vld [vmem:[%s4880_s3 + $0x258] sm:$0xff] }
 0x1b7   : > { %2038 = vmatpush.msra.mxu3 %v1905_v30  ;;  %3087 = vmatpush.msk.msrb.mxu2 %vm741_vm4, %v3085_v45  ;;  %v3072_v30 = vld [vmem:[%s4880_s3 + $0x248] sm:$0xff] }
 0x1b8   : > { %2996 = vmatmul.msk.f32.gmra.mxu3 %vm1749_vm7, %v2988_v47  ;;  %v3004_v47 = vld [vmem:[%s4880_s3 + $0xb8] sm:$0xff] }
 0x1b9   : > { %2039 = vmatpush.msra.mxu3 %v1903_v5  ;;  %2181 = vmatpush.msrb.mxu2 %v3083_v46  ;;  %v3070_v5 = vld [vmem:[%s4880_s3 + $0x238] sm:$0xff]  ;;  %v3113_v46 = vld [vmem:[%s4880_s3 + $0x360] sm:$0xf] }
 0x1ba   : > { %1989 = vmatpush.msra.mxu1 %v3004_v47  ;;  %v3110_v47 = vld [vmem:[%s4880_s3 + $0x348] sm:$0xff] }
 0x1bb   : > { %2040 = vmatpush.msra.mxu3 %v1901_v43  ;;  %2182 = vmatpush.msrb.mxu2 %v3081_v37  ;;  %v3068_v43 = vld [vmem:[%s4880_s3 + $0x228] sm:$0xff]  ;;  %v3112_v37 = vld [vmem:[%s4880_s3 + $0x358] sm:$0xff] }
 0x1bd   : > { %2041 = vmatpush.msra.mxu3 %v1899_v29  ;;  %v3066_v29 = vld [vmem:[%s4880_s3 + $0x218] sm:$0xff] }
 0x1bf   : > { %2042 = vmatpush.msra.mxu3 %v1897_v41  ;;  %v3039_v41 = vld [vmem:[%s4880_s3 + $0x170] sm:$0xff] }
 0x1c0   : > { %3001 = vmatmul.msk.f32.vlgmr.msrb.gmra.mxu3 %vm1749_vm7, %v4167_v7 }
 0x1c1   : > { %2043 = vmatpush.msra.mxu3 %v1895_v54 }
 0x1c3   : > { %2044 = vmatpush.msra.mxu3 %v1893_v16 }
 0x1c5   : > { %2045 = vmatpush.msra.mxu3 %v1891_v44 }
 0x1c7   : > { %3090 = vmatpush.msk.msrb.mxu3 %vm741_vm4, %v3086_v49 }
 0x1c8   : > { %3002 = vmatmul.msk.f32.gmra.mxu3 %vm1749_vm7, %v2990_v50  ;;  %v3003_v50 = vld [vmem:[%s4880_s3 + $0xb0] sm:$0xff] }
 0x1c9   : > { %2204 = vmatpush.msrb.mxu3 %v3084_v22  ;;  %1966 = vmatpush.msra.mxu0 %v3003_v50  ;;  %v3109_v50 = vld [vmem:[%s4880_s3 + $0x340] sm:$0xff] }
 0x1cb   : > { %2205 = vmatpush.msrb.mxu3 %v3082_v4 }
 0x223   : > { %v1779_v28 = vpop.f32.mrf.mxu3  ;;  %v1831_v48 = vpop.f32.mrf.mxu2 }
 0x224   : > { %v4188_v6 = vmax.f32 %v1779_v28, %v1831_v48  ;;  %v3057_v28 = vld [vmem:[%s4880_s3 + $0x200] sm:$0xf]  ;;  %v3058_v48 = vld [vmem:[%s4880_s3 + $0x208] sm:$0xf] }
 0x225   : > { %3059 = vmatpush.msk.msrb.mxu0 %vm741_vm4, %v3057_v28  ;;  %3062 = vmatpush.msk.msrb.mxu1 %vm741_vm4, %v3058_v48  ;;  %v3107_v48 = vld [vmem:[%s4880_s3 + $0x330] sm:$0xff] }
 0x226   : > { %1868 = vrot.lane.b32.xlu0 %v4188_v6, %s3286_s12 }
 0x22b   : > { %v1834_v8 = vpop.f32.mrf.mxu2  ;;  %v1782_v31 = vpop.f32.mrf.mxu3 }
 0x22c   : > { %v4191_v9 = vmax.f32 %v1782_v31, %v1834_v8  ;;  %v3079_v8 = vld [vmem:[%s4880_s3 + $0x280] sm:$0xff]  ;;  %v3080_v31 = vld [vmem:[%s4880_s3 + $0x288] sm:$0xff] }
 0x22d   : > { %2183 = vmatpush.msrb.mxu2 %v3079_v8  ;;  %2206 = vmatpush.msrb.mxu3 %v3080_v31  ;;  %v3108_v8 = vld [vmem:[%s4880_s3 + $0x338] sm:$0xff]  ;;  %v3105_v31 = vld [vmem:[%s4880_s3 + $0x320] sm:$0xff] }
 0x22e   : > { %1872 = vrot.lane.b32.xlu1 %v4191_v9, %s3286_s12 }
 0x233   : > { %v1802_v32 = vpop.f32.mrf.mxu3 }
 0x23b   : > { %v1805_v56 = vpop.f32.mrf.mxu3 }
 0x243   : > { %v1854_v57 = vpop.f32.mrf.mxu3 }
 0x244   : > { %v1861_v10 = vmax.f32 %v1802_v32, %v1854_v57  ;;  %v3055_v32 = vld [vmem:[%s4880_s3 + $0x1f0] sm:$0xff] }
 0x245   : > { %v3077_v57 = vld [vmem:[%s4880_s3 + $0x270] sm:$0xff]  ;;  %2095 = vmatpush.msrb.mxu0 %v3055_v32  ;;  %v3106_v32 = vld [vmem:[%s4880_s3 + $0x328] sm:$0xff] }
 0x246   : > { %1870 = vrot.lane.b32.xlu0 %v1861_v10, %s3286_s12  ;;  %v3078_v10 = vld [vmem:[%s4880_s3 + $0x278] sm:$0xff]  ;;  %2184 = vmatpush.msrb.mxu2 %v3077_v57  ;;  %v3103_v57 = vld [vmem:[%s4880_s3 + $0x310] sm:$0xff] }
 0x247   : > { %2207 = vmatpush.msrb.mxu3 %v3078_v10  ;;  %v3104_v10 = vld [vmem:[%s4880_s3 + $0x318] sm:$0xff] }
 0x248   : > { %2185 = vmatpush.msrb.mxu2 %v3075_v14  ;;  %v3102_v14 = vld [vmem:[%s4880_s3 + $0x308] sm:$0xff] }
 0x249   : > { %2208 = vmatpush.msrb.mxu3 %v3076_v20 }
 0x24a   : > { %2186 = vmatpush.msrb.mxu2 %v3073_v36  ;;  %v3097_v36 = vld [vmem:[%s4880_s3 + $0x2e0] sm:$0xff] }
 0x24b   : > { %v1857_v11 = vpop.f32.mrf.mxu3  ;;  %2209 = vmatpush.msrb.mxu3 %v3074_v59  ;;  %v3098_v59 = vld [vmem:[%s4880_s3 + $0x2e8] sm:$0xff] }
 0x24c   : > { %v1863_v15 = vmax.f32 %v1805_v56, %v1857_v11  ;;  %v3056_v56 = vld [vmem:[%s4880_s3 + $0x1f8] sm:$0xff]  ;;  %v3053_v11 = vld [vmem:[%s4880_s3 + $0x1e0] sm:$0xff]  ;;  %2187 = vmatpush.msrb.mxu2 %v3071_v19 }
 0x24d   : > { %2118 = vmatpush.msrb.mxu1 %v3056_v56  ;;  %2096 = vmatpush.msrb.mxu0 %v3053_v11  ;;  %v3093_v19 = vld [vmem:[%s4880_s3 + $0x2c0] sm:$0xff] }
 0x24e   : > { %1874 = vrot.lane.b32.xlu1 %v1863_v15, %s3286_s12  ;;  %v3054_v15 = vld [vmem:[%s4880_s3 + $0x1e8] sm:$0xff]  ;;  %2210 = vmatpush.msrb.mxu3 %v3072_v30  ;;  %s3241_s12 = scalar_lea.hbm %s4888_s11, 2 }
 0x24f   : > { %2119 = vmatpush.msrb.mxu1 %v3054_v15  ;;  %2097 = vmatpush.msrb.mxu0 %v3051_v42  ;;  %v3101_v15 = vld [vmem:[%s4880_s3 + $0x300] sm:$0xff]  ;;  %v3099_v42 = vld [vmem:[%s4880_s3 + $0x2f0] sm:$0xff]  ;;  %v3094_v30 = vld [vmem:[%s4880_s3 + $0x2c8] sm:$0xff]  ;;  %p3243_p1 = scmp.lt.s32.totalorder %s3241_s12, %s3237_s0 }
 0x250   : > { %2188 = vmatpush.msrb.mxu2 %v3069_v40  ;;  %2211 = vmatpush.msrb.mxu3 %v3070_v5 }
 0x251   : > { %2120 = vmatpush.msrb.mxu1 %v3052_v1  ;;  %2098 = vmatpush.msrb.mxu0 %v3049_v62  ;;  %v3100_v1 = vld [vmem:[%s4880_s3 + $0x2f8] sm:$0xff]  ;;  %v3095_v62 = vld [vmem:[%s4880_s3 + $0x2d0] sm:$0xff]  ;;  %p3244_p2 = por %p3243_p1, %p3242_p0 }
 0x252   : > { %2189 = vmatpush.msrb.mxu2 %v3067_v23  ;;  %2212 = vmatpush.msrb.mxu3 %v3068_v43 }
 0x253   : > { %2121 = vmatpush.msrb.mxu1 %v3050_v0  ;;  %2099 = vmatpush.msrb.mxu0 %v3047_v12  ;;  %v3096_v0 = vld [vmem:[%s4880_s3 + $0x2d8] sm:$0xff]  ;;  %p3245_p3 = pnand %p3244_p2, %p3240_p13 }
 0x254   : > { %2190 = vmatpush.msrb.mxu2 %v3065_v38  ;;  %2213 = vmatpush.msrb.mxu3 %v3066_v29 }
 0x255   : > { %2122 = vmatpush.msrb.mxu1 %v3048_v13  ;;  %2100 = vmatpush.msrb.mxu0 %v3045_v17 }
 0x257   : > { %2123 = vmatpush.msrb.mxu1 %v3046_v39  ;;  %2101 = vmatpush.msrb.mxu0 %v3043_v26 }
 0x259   : > { %2124 = vmatpush.msrb.mxu1 %v3044_v52  ;;  %2102 = vmatpush.msrb.mxu0 %v3041_v53 }
 0x25b   : > { %2125 = vmatpush.msrb.mxu1 %v3042_v35  ;;  %2103 = vmatpush.msrb.mxu0 %v3039_v41 }
 0x25d   : > { %2126 = vmatpush.msrb.mxu1 %v3040_v51  ;;  %2104 = vmatpush.msrb.mxu0 %v3037_v60 }
 0x25f   : > { %2127 = vmatpush.msrb.mxu1 %v3038_v33 }
 0x298   : > { %v1869_v18 = vpop.permute.xlu0 %1868 }
 0x2a0   : > { %v1873_v54 = vpop.permute.xlu1 %1872 }
 0x2b8   : > { %v1871_v34 = vpop.permute.xlu0 %1870 }
 0x2b9   : > { %v1877_v24 = vsel %vm1876_vm10, %v1869_v18, %v1871_v34 }
 0x2ba   : > { %v1881_v16 = vmax.f32 %v4188_v6, %v1877_v24 }
 0x2bc   : > { %v1886_v21 = vadd.f32 %v3219_v55, %v1881_v16 }
 0x2be   : > { %v4470_v61 = vmax.f32 %v1886_v21, 0.0 }
 0x2c0   : > { %3032 = vmatmul.msk.f32.vlgmr.msra.gmra.mxu2 %vm1940_vm11, %v4470_v61  ;;  %3035 = vmatmul.msk.f32.vlgmr.msra.gmra.mxu3 %vm1940_vm11, %v4470_v61  ;;  %v1875_v25 = vpop.permute.xlu1 %1874  ;;  %v1937_v6 = vrot.slane %v4470_v61, 1  ;;  %v2162_v4 = vrot.slane %v4470_v61, 3  ;;  %v2076_v11 = vrot.slane %v4470_v61, 2  ;;  %v2248_v13 = vrot.slane %v4470_v61, 4 }
 0x2c1   : > { %v1878_v44 = vsel %vm1876_vm10, %v1873_v54, %v1875_v25 }
 0x2c2   : > { %v1882_v45 = vmax.f32 %v4191_v9, %v1878_v44  ;;  %v3114_v9 = vld [vmem:[%s4880_s3 + $0x368] sm:$0xf] }
 0x2c4   : > { %v1887_v49 = vadd.f32 %v3219_v55, %v1882_v45 }
 0x2c6   : > { %v4477_v2 = vmax.f32 %v1887_v49, 0.0 }
 0x2c8   : > { %3033 = vmatmul.msk.f32.gmra.mxu2 %vm1940_vm11, %v4477_v2  ;;  %3036 = vmatmul.msk.f32.gmra.mxu3 %vm1940_vm11, %v4477_v2  ;;  %v1938_v27 = vrot.slane %v4477_v2, 1  ;;  %v2163_v58 = vrot.slane %v4477_v2, 3  ;;  %v2077_v56 = vrot.slane %v4477_v2, 2  ;;  %v2249_v12 = vrot.slane %v4477_v2, 4 }
 0x2ca   : > { %v1939_v22 = vsel %vm409_vm1, %v1937_v6, %v1938_v27  ;;  %v2164_v28 = vsel %vm650_vm2, %v2162_v4, %v2163_v58  ;;  %v2078_v20 = vsel %vm559_vm3, %v2076_v11, %v2077_v56  ;;  %v2250_v40 = vsel %vm741_vm4, %v2248_v13, %v2249_v12  ;;  %v3138_v4 = vld [vmem:[%s4882_s5 + $0x98] sm:$0xff]  ;;  %v3147_v13 = vld [vmem:[%s4882_s5 + $0xd0] sm:$0xff] }
 0x2cb   : > { %3026 = vmatmul.msk.f32.vlgmr.msra.gmra.mxu0 %vm1940_vm11, %v1939_v22  ;;  %3029 = vmatmul.msk.f32.vlgmr.msra.gmra.mxu1 %vm1940_vm11, %v1939_v22 }
 0x2cc   : > { %3115 = vmatpush.msk.msra.mxu0 %vm741_vm4, %v3113_v46  ;;  %3118 = vmatpush.msk.msra.mxu1 %vm741_vm4, %v3114_v9 }
 0x2ce   : > { %2267 = vmatpush.msra.mxu0 %v3111_v3  ;;  %2290 = vmatpush.msra.mxu1 %v3112_v37 }
 0x2d0   : > { %3088 = vmatmul.msk.f32.vlgmr.msrb.gmra.mxu2 %vm1940_vm11, %v2164_v28  ;;  %3091 = vmatmul.msk.f32.vlgmr.msrb.gmra.mxu3 %vm1940_vm11, %v2164_v28  ;;  %v3150_v28 = vld [vmem:[%s4882_s5 + $0xe8] sm:$0xff] }
 0x2d1   : > { %2268 = vmatpush.msra.mxu0 %v3109_v50  ;;  %2291 = vmatpush.msra.mxu1 %v3110_v47  ;;  %v3137_v50 = vld [vmem:[%s4882_s5 + $0x90] sm:$0xff]  ;;  %v2430_v47 = vld [vmem:[%s4882_s5 + $0x48] sm:$0xff] }
 0x2d3   : > { %3027 = vmatmul.msk.f32.gmra.mxu0 %vm1940_vm11, %v1938_v27  ;;  %3030 = vmatmul.msk.f32.gmra.mxu1 %vm1940_vm11, %v1938_v27 }
 0x2d4   : > { %2269 = vmatpush.msra.mxu0 %v3107_v48  ;;  %2292 = vmatpush.msra.mxu1 %v3108_v8  ;;  %v3161_v48 = vld [vmem:[%s4882_s5 + $0x138] sm:$0xff]  ;;  %v3135_v8 = vld [vmem:[%s4882_s5 + $0x80] sm:$0xff] }
 0x2d6   : > { %2270 = vmatpush.msra.mxu0 %v3105_v31  ;;  %2293 = vmatpush.msra.mxu1 %v3106_v32  ;;  %v3134_v31 = vld [vmem:[%s4882_s5 + $0x78] sm:$0xff]  ;;  %v3133_v32 = vld [vmem:[%s4882_s5 + $0x70] sm:$0xff] }
 0x2d8   : > { %3089 = vmatmul.msk.f32.gmra.mxu2 %vm1940_vm11, %v2163_v58  ;;  %3092 = vmatmul.msk.f32.gmra.mxu3 %vm1940_vm11, %v2163_v58 }
 0x2d9   : > { %2271 = vmatpush.msra.mxu0 %v3103_v57  ;;  %2294 = vmatpush.msra.mxu1 %v3104_v10 }
 0x2db   : > { %3060 = vmatmul.msk.f32.vlgmr.msrb.gmra.mxu0 %vm1940_vm11, %v2078_v20  ;;  %3063 = vmatmul.msk.f32.vlgmr.msrb.gmra.mxu1 %vm1940_vm11, %v2078_v20 }
 0x2dc   : > { %2272 = vmatpush.msra.mxu0 %v3101_v15  ;;  %2295 = vmatpush.msra.mxu1 %v3102_v14 }
 0x2de   : > { %2273 = vmatpush.msra.mxu0 %v3099_v42  ;;  %2296 = vmatpush.msra.mxu1 %v3100_v1  ;;  %v2428_v42 = vld [vmem:[%s4882_s5 + $0x38] sm:$0xff]  ;;  %v3149_v1 = vld [vmem:[%s4882_s5 + $0xe0] sm:$0xff] }
 0x2e0   : > { %2274 = vmatpush.msra.mxu0 %v3097_v36  ;;  %2297 = vmatpush.msra.mxu1 %v3098_v59  ;;  %v3160_v36 = vld [vmem:[%s4882_s5 + $0x130] sm:$0xff]  ;;  %v3131_v59 = vld [vmem:[%s4882_s5 + $0x60] sm:$0xff] }
 0x2e2   : > { %2275 = vmatpush.msra.mxu0 %v3095_v62  ;;  %2298 = vmatpush.msra.mxu1 %v3096_v0  ;;  %v2427_v62 = vld [vmem:[%s4882_s5 + $0x30] sm:$0xff]  ;;  %v3148_v0 = vld [vmem:[%s4882_s5 + $0xd8] sm:$0xff] }
 0x2e3   : > { %3061 = vmatmul.msk.f32.gmra.mxu0 %vm1940_vm11, %v2077_v56  ;;  %3064 = vmatmul.msk.f32.gmra.mxu1 %vm1940_vm11, %v2077_v56  ;;  %v3132_v56 = vld [vmem:[%s4882_s5 + $0x68] sm:$0xff] }
 0x2e4   : > { %2276 = vmatpush.msra.mxu0 %v3093_v19  ;;  %2299 = vmatpush.msra.mxu1 %v3094_v30  ;;  %v3159_v19 = vld [vmem:[%s4882_s5 + $0x128] sm:$0xff]  ;;  %v3130_v30 = vld [vmem:[%s4882_s5 + $0x58] sm:$0xff] }
 0x2e6   : > { %2453 = vmatpush.msrb.mxu0 %v3138_v4  ;;  %2475 = vmatpush.msrb.mxu1 %v2430_v47 }
 0x2e8   : > { %2454 = vmatpush.msrb.mxu0 %v3137_v50 }
 0x2eb   : > { %3116 = vmatmul.msk.f32.vlgmr.msra.gmra.mxu0 %vm1940_vm11, %v2250_v40  ;;  %3119 = vmatmul.msk.f32.vlgmr.msra.gmra.mxu1 %vm1940_vm11, %v2250_v40  ;;  %v3158_v40 = vld [vmem:[%s4882_s5 + $0x120] sm:$0xff] }
 0x2f3   : > { %3117 = vmatmul.msk.f32.gmra.mxu0 %vm1940_vm11, %v2249_v12  ;;  %3120 = vmatmul.msk.f32.gmra.mxu1 %vm1940_vm11, %v2249_v12  ;;  %v2426_v12 = vld [vmem:[%s4882_s5 + $0x28] sm:$0xff] }
 0x343   : > { %v2024_v39 = vpop.f32.mrf.mxu2  ;;  %v2047_v23 = vpop.f32.mrf.mxu3 }
 0x348   : > { %v1968_v5 = vpop.f32.mrf.mxu0  ;;  %v1991_v17 = vpop.f32.mrf.mxu1 }
 0x349   : > { %v2025_v34 = vadd.f32 %v2024_v39, %v1968_v5  ;;  %v2048_v24 = vadd.f32 %v2047_v23, %v1991_v17  ;;  %v3129_v5 = vld [vmem:[%s4882_s5 + $0x50] sm:$0xff]  ;;  %v2425_v17 = vld [vmem:[%s4882_s5 + $0x20] sm:$0xff]  ;;  %v3146_v39 = vld [vmem:[%s4882_s5 + $0xc8] sm:$0xff] }
 0x34a   : > { %v3157_v23 = vld [vmem:[%s4882_s5 + $0x118] sm:$0xff] }
 0x34b   : > { %v2027_v29 = vpop.f32.mrf.mxu2  ;;  %v2050_v18 = vpop.f32.mrf.mxu3 }
 0x350   : > { %v1971_v43 = vpop.f32.mrf.mxu0  ;;  %v1994_v26 = vpop.f32.mrf.mxu1 }
 0x351   : > { %v2028_v54 = vadd.f32 %v2027_v29, %v1971_v43  ;;  %v2051_v55 = vadd.f32 %v2050_v18, %v1994_v26  ;;  %v3172_v43 = vld [vmem:[%s4882_s5 + $0x188] sm:$0xff]  ;;  %v2424_v26 = vld [vmem:[%s4882_s5 + $0x18] sm:$0xff]  ;;  %v3171_v29 = vld [vmem:[%s4882_s5 + $0x180] sm:$0xff] }
 0x352   : > { %v2423_v18 = vld [vmem:[%s4882_s5 + $0x10] sm:$0xff] }
 0x353   : > { %v2192_v41 = vpop.f32.mrf.mxu2  ;;  %v2215_v51 = vpop.f32.mrf.mxu3 }
 0x358   : > { %v2106_v52 = vpop.f32.mrf.mxu0  ;;  %v2129_v38 = vpop.f32.mrf.mxu1 }
 0x359   : > { %v2135_v61 = vadd.f32 %v2106_v52, %v2025_v34  ;;  %v2136_v25 = vadd.f32 %v2129_v38, %v2048_v24  ;;  %v3145_v52 = vld [vmem:[%s4882_s5 + $0xc0] sm:$0xff]  ;;  %v3156_v38 = vld [vmem:[%s4882_s5 + $0x110] sm:$0xff]  ;;  %v3142_v34 = vld [vmem:[%s4882_s5 + $0xa8] sm:$0xff] }
 0x35a   : > { %v3153_v24 = vld [vmem:[%s4882_s5 + $0xf8] sm:$0xff] }
 0x35b   : > { %v2195_v44 = vpop.f32.mrf.mxu2  ;;  %v2218_v45 = vpop.f32.mrf.mxu3  ;;  %v2221_v46 = vadd.f32 %v2192_v41, %v2135_v61  ;;  %v2222_v9 = vadd.f32 %v2215_v51, %v2136_v25  ;;  %v3170_v41 = vld [vmem:[%s4882_s5 + $0x178] sm:$0xff]  ;;  %v2422_v51 = vld [vmem:[%s4882_s5 + $0x8] sm:$0xff]  ;;  %v3152_v61 = vld [vmem:[%s4882_s5 + $0xf0] sm:$0xff] }
 0x35c   : > { %v3167_v25 = vld [vmem:[%s4882_s5 + $0x160] sm:$0xff] }
 0x360   : > { %v2109_v53 = vpop.f32.mrf.mxu0  ;;  %v2132_v35 = vpop.f32.mrf.mxu1 }
 0x361   : > { %v2137_v16 = vadd.f32 %v2109_v53, %v2028_v54  ;;  %v2138_v21 = vadd.f32 %v2132_v35, %v2051_v55  ;;  %v3144_v53 = vld [vmem:[%s4882_s5 + $0xb8] sm:$0xff]  ;;  %v3155_v35 = vld [vmem:[%s4882_s5 + $0x108] sm:$0xff]  ;;  %v3169_v54 = vld [vmem:[%s4882_s5 + $0x170] sm:$0xff] }
 0x362   : > { %v2421_v55 = vld [vmem:[%s4882_s5] sm:$0xff] }
 0x363   : > { %v2223_v49 = vadd.f32 %v2195_v44, %v2137_v16  ;;  %v2224_v2 = vadd.f32 %v2218_v45, %v2138_v21  ;;  %v3168_v16 = vld [vmem:[%s4882_s5 + $0x168] sm:$0xff]  ;;  %v3141_v21 = vld [vmem:[%s4882_s5 + $0xa0] sm:$0xff]  ;;  %v3166_v44 = vld [vmem:[%s4882_s5 + $0x158] sm:$0xff] }
 0x364   : > { %v3165_v45 = vld [vmem:[%s4882_s5 + $0x150] sm:$0xff] }
 0x368   : > { %v2278_v60 = vpop.f32.mrf.mxu0  ;;  %v2301_v33 = vpop.f32.mrf.mxu1 }
 0x369   : > { %v2307_v3 = vadd.f32 %v2278_v60, %v2221_v46  ;;  %v2308_v37 = vadd.f32 %v2301_v33, %v2222_v9  ;;  %v3143_v60 = vld [vmem:[%s4882_s5 + $0xb0] sm:$0xff]  ;;  %v3154_v33 = vld [vmem:[%s4882_s5 + $0x100] sm:$0xff]  ;;  %v2610_v46 = vld [vmem:[%s4884_s7 + $0x68] sm:$0xff] }
 0x36a   : > { %v2609_v9 = vld [vmem:[%s4884_s7 + $0x60] sm:$0xff] }
 0x370   : > { %v2281_v6 = vpop.f32.mrf.mxu0  ;;  %v2304_v27 = vpop.f32.mrf.mxu1 }
 0x371   : > { %v2309_v22 = vadd.f32 %v2281_v6, %v2223_v49  ;;  %v2310_v58 = vadd.f32 %v2304_v27, %v2224_v2  ;;  %v3164_v49 = vld [vmem:[%s4882_s5 + $0x148] sm:$0xff]  ;;  %v3163_v2 = vld [vmem:[%s4882_s5 + $0x140] sm:$0xff]  ;;  %v2612_v6 = vld [vmem:[%s4884_s7 + $0x78] sm:$0xff] }
 0x372   : > { %v2611_v27 = vld [vmem:[%s4884_s7 + $0x70] sm:$0xff] }
 0x373   : > { %3121 = vmatpush.msk.msra.mxu2 %vm2315_vm12, %v2309_v22  ;;  %3123 = vmatpush.msk.msra.mxu3 %vm2315_vm12, %v2310_v58 }
 0x375   : > { %2337 = vmatpush.msra.mxu2 %v2307_v3  ;;  %2357 = vmatpush.msra.mxu3 %v2308_v37 }
 0x376   : > { %3122 = vmatmul.msk.f32.vlgmr.msra.gmra.mxu2 %vm2312_vm13, %v4164_v63  ;;  %3124 = vmatmul.msk.f32.vlgmr.msra.gmra.mxu3 %vm2312_vm13, %v4164_v63  ;;  %v3136_v63 = vld [vmem:[%s4882_s5 + $0x88] sm:$0xff] }
 0x377   : > { %3127 = vmatpush.msk.msrb.mxu3 %vm2315_vm12, %v2310_v58  ;;  %3125 = vmatpush.msk.msrb.mxu2 %vm2315_vm12, %v2309_v22  ;;  %v2608_v58 = vld [vmem:[%s4884_s7 + $0x58] sm:$0xff] }
 0x378   : > { %2455 = vmatpush.msrb.mxu0 %v3136_v63 }
 0x379   : > { %2399 = vmatpush.msrb.mxu3 %v2308_v37  ;;  %2379 = vmatpush.msrb.mxu2 %v2307_v3  ;;  %v2607_v3 = vld [vmem:[%s4884_s7 + $0x50] sm:$0xff]  ;;  %v3220_v37 = vld [vmem:[%s4881_s4] ss:$0 sm:$0xff] }
 0x37a   : > { %2456 = vmatpush.msrb.mxu0 %v3135_v8 }
 0x37b   : > { %2509 = vmatpush.msra.mxu2 %v3150_v28  ;;  %2544 = vmatpush.msra.mxu3 %v3161_v48 }
 0x37c   : > { %2457 = vmatpush.msrb.mxu0 %v3134_v31 }
 0x37d   : > { %2510 = vmatpush.msra.mxu2 %v3149_v1  ;;  %2545 = vmatpush.msra.mxu3 %v3160_v36  ;;  %v2597_v1 = vld [vmem:[%s4884_s7] sm:$0xff]  ;;  %v2650_v36 = vld [vmem:[%s4886_s9 + $0x78] sm:$0xff] }
 0x37e   : > { %3126 = vmatmul.msk.f32.vlgmr.msrb.gmra.mxu2 %vm2312_vm13, %v4167_v7  ;;  %3128 = vmatmul.msk.f32.vlgmr.msrb.gmra.mxu3 %vm2312_vm13, %v4167_v7  ;;  %v2429_v7 = vld [vmem:[%s4882_s5 + $0x40] sm:$0xff] }
 0x37f   : > { %2476 = vmatpush.msrb.mxu1 %v2429_v7  ;;  %2458 = vmatpush.msrb.mxu0 %v3133_v32  ;;  %v2606_v32 = vld [vmem:[%s4884_s7 + $0x48] sm:$0xff] }
 0x380   : > { %2511 = vmatpush.msra.mxu2 %v3148_v0  ;;  %2546 = vmatpush.msra.mxu3 %v3159_v19  ;;  %v2647_v0 = vld [vmem:[%s4886_s9 + $0x60] sm:$0xff]  ;;  %v2646_v19 = vld [vmem:[%s4886_s9 + $0x58] sm:$0xff] }
 0x381   : > { %2459 = vmatpush.msrb.mxu0 %v3132_v56  ;;  %2477 = vmatpush.msrb.mxu1 %v2428_v42  ;;  %v2605_v56 = vld [vmem:[%s4884_s7 + $0x40] sm:$0xff]  ;;  %v2598_v42 = vld [vmem:[%s4884_s7 + $0x8] sm:$0xff] }
 0x382   : > { %2512 = vmatpush.msra.mxu2 %v3147_v13  ;;  %2547 = vmatpush.msra.mxu3 %v3158_v40  ;;  %v2643_v13 = vld [vmem:[%s4886_s9 + $0x40] sm:$0xff]  ;;  %v2642_v40 = vld [vmem:[%s4886_s9 + $0x38] sm:$0xff] }
 0x383   : > { %2460 = vmatpush.msrb.mxu0 %v3131_v59  ;;  %2478 = vmatpush.msrb.mxu1 %v2427_v62  ;;  %v2649_v59 = vld [vmem:[%s4886_s9 + $0x70] sm:$0xff]  ;;  %v2648_v62 = vld [vmem:[%s4886_s9 + $0x68] sm:$0xff] }
 0x384   : > { %2513 = vmatpush.msra.mxu2 %v3146_v39  ;;  %2548 = vmatpush.msra.mxu3 %v3157_v23  ;;  %v2640_v39 = vld [vmem:[%s4886_s9 + $0x28] sm:$0xff] }
 0x385   : > { %2461 = vmatpush.msrb.mxu0 %v3130_v30  ;;  %2479 = vmatpush.msrb.mxu1 %v2426_v12  ;;  %v2645_v30 = vld [vmem:[%s4886_s9 + $0x50] sm:$0xff]  ;;  %v2644_v12 = vld [vmem:[%s4886_s9 + $0x48] sm:$0xff] }
 0x386   : > { %2514 = vmatpush.msra.mxu2 %v3145_v52  ;;  %2549 = vmatpush.msra.mxu3 %v3156_v38 }
 0x387   : > { %2462 = vmatpush.msrb.mxu0 %v3129_v5  ;;  %2480 = vmatpush.msrb.mxu1 %v2425_v17  ;;  %v2641_v17 = vld [vmem:[%s4886_s9 + $0x30] sm:$0xff] }
 0x388   : > { %2515 = vmatpush.msra.mxu2 %v3144_v53  ;;  %2550 = vmatpush.msra.mxu3 %v3155_v35 }
 0x389   : > { %2579 = vmatpush.msra.mxu0 %v3172_v43  ;;  %2481 = vmatpush.msrb.mxu1 %v2424_v26  ;;  %v2639_v26 = vld [vmem:[%s4886_s9 + $0x20] sm:$0xff] }
 0x38a   : > { %2516 = vmatpush.msra.mxu2 %v3143_v60  ;;  %2551 = vmatpush.msra.mxu3 %v3154_v33 }
 0x38b   : > { %2580 = vmatpush.msra.mxu0 %v3171_v29  ;;  %2482 = vmatpush.msrb.mxu1 %v2423_v18  ;;  %v2638_v29 = vld [vmem:[%s4886_s9 + $0x18] sm:$0xff] }
 0x38c   : > { %2517 = vmatpush.msra.mxu2 %v3142_v34  ;;  %2552 = vmatpush.msra.mxu3 %v3153_v24  ;;  %v2635_v34 = vld [vmem:[%s4886_s9] sm:$0xff] }
 0x38d   : > { %2581 = vmatpush.msra.mxu0 %v3170_v41  ;;  %2483 = vmatpush.msrb.mxu1 %v2422_v51  ;;  %v2594_v41 = vld [vmem:[%s4883_s6] sm:$0x1] }
 0x38e   : > { %2518 = vmatpush.msra.mxu2 %v3141_v21  ;;  %2553 = vmatpush.msra.mxu3 %v3152_v61  ;;  %v2613_v24 = vld [vmem:[%s4885_s8] sm:$0x1] }
 0x38f   : > { %2582 = vmatpush.msra.mxu0 %v3169_v54  ;;  %2484 = vmatpush.msrb.mxu1 %v2421_v55  ;;  %v2637_v54 = vld [vmem:[%s4886_s9 + $0x10] sm:$0xff]  ;;  %v2636_v55 = vld [vmem:[%s4886_s9 + $0x8] sm:$0xff] }
 0x390   : > { %2652 = vmatpush.msrb.mxu2 %v2650_v36 }
 0x391   : > { %2583 = vmatpush.msra.mxu0 %v3168_v16  ;;  %2614 = vmatpush.msra.mxu1 %v2612_v6 }
 0x392   : > { %2653 = vmatpush.msrb.mxu2 %v2649_v59 }
 0x393   : > { %2584 = vmatpush.msra.mxu0 %v3167_v25  ;;  %2615 = vmatpush.msra.mxu1 %v2611_v27  ;;  %v2651_v25 = vld [vmem:[%s4887_s10] sm:$0x1] }
 0x394   : > { %2654 = vmatpush.msrb.mxu2 %v2648_v62 }
 0x395   : > { %2585 = vmatpush.msra.mxu0 %v3166_v44  ;;  %2616 = vmatpush.msra.mxu1 %v2610_v46 }
 0x396   : > { %2655 = vmatpush.msrb.mxu2 %v2647_v0 }
 0x397   : > { %2586 = vmatpush.msra.mxu0 %v3165_v45  ;;  %2617 = vmatpush.msra.mxu1 %v2609_v9 }
 0x398   : > { %2656 = vmatpush.msrb.mxu2 %v2646_v19 }
 0x399   : > { %2587 = vmatpush.msra.mxu0 %v3164_v49  ;;  %2618 = vmatpush.msra.mxu1 %v2608_v58 }
 0x39a   : > { %2657 = vmatpush.msrb.mxu2 %v2645_v30 }
 0x39b   : > { %2588 = vmatpush.msra.mxu0 %v3163_v2  ;;  %2619 = vmatpush.msra.mxu1 %v2607_v3 }
 0x39c   : > { %2658 = vmatpush.msrb.mxu2 %v2644_v12 }
 0x39d   : > { %2620 = vmatpush.msra.mxu1 %v2606_v32 }
 0x39e   : > { %2659 = vmatpush.msrb.mxu2 %v2643_v13 }
 0x39f   : > { %2621 = vmatpush.msra.mxu1 %v2605_v56 }
 0x3a0   : > { %2660 = vmatpush.msrb.mxu2 %v2642_v40 }
 0x3a2   : > { %2661 = vmatpush.msrb.mxu2 %v2641_v17 }
 0x3a4   : > { %2662 = vmatpush.msrb.mxu2 %v2640_v39 }
 0x3a6   : > { %2663 = vmatpush.msrb.mxu2 %v2639_v26 }
 0x3a8   : > { %2664 = vmatpush.msrb.mxu2 %v2638_v29 }
 0x3aa   : > { %2665 = vmatpush.msrb.mxu2 %v2637_v54 }
 0x3ac   : > { %2666 = vmatpush.msrb.mxu2 %v2636_v55 }
 0x3ae   : > { %2667 = vmatpush.msrb.mxu2 %v2635_v34 }
 0x3f9   : > { %v2339_v57 = vpop.f32.mrf.mxu2  ;;  %v2359_v10 = vpop.f32.mrf.mxu3 }
 0x401   : > { %v2381_v11 = vpop.f32.mrf.mxu2  ;;  %v2401_v14 = vpop.f32.mrf.mxu3 }
 0x402   : > { %v4616_v15 = vmax.f32 %v2339_v57, %v2381_v11  ;;  %v2405_v20 = vmax.f32 %v2359_v10, %v2401_v14  ;;  %v2604_v57 = vld [vmem:[%s4884_s7 + $0x38] sm:$0xff]  ;;  %v2603_v10 = vld [vmem:[%s4884_s7 + $0x30] sm:$0xff]  ;;  %v2602_v11 = vld [vmem:[%s4884_s7 + $0x28] sm:$0xff] }
 0x403   : > { %2622 = vmatpush.msra.mxu1 %v2604_v57  ;;  %v2600_v14 = vld [vmem:[%s4884_s7 + $0x18] sm:$0xff] }
 0x404   : > { %2408 = vrot.lane.b32.xlu2 %v4616_v15, %s3287_s15 }
 0x405   : > { %2623 = vmatpush.msra.mxu1 %v2603_v10 }
 0x407   : > { %2624 = vmatpush.msra.mxu1 %v2602_v11 }
 0x40c   : > { %2410 = vrot.lane.b32.xlu2 %v2405_v20, %s3287_s15  ;;  %v2599_v20 = vld [vmem:[%s4884_s7 + $0x10] sm:$0xff] }
 0x45e   : > { %v2409_v22 = vpop.permute.xlu2 %2408 }
 0x466   : > { %v2411_v4 = vpop.permute.xlu2 %2410 }
 0x467   : > { %v2413_v50 = vsel %vm2412_vm14, %v2409_v22, %v2411_v4 }
 0x468   : > { %v2415_v47 = vmax.f32 %v4616_v15, %v2413_v50  ;;  %v2601_v15 = vld [vmem:[%s4884_s7 + $0x20] sm:$0xff] }
 0x469   : > { %2625 = vmatpush.msra.mxu1 %v2601_v15 }
 0x46a   : > { %v2419_v63 = vadd.f32 %v3220_v37, %v2415_v47 }
 0x46b   : > { %2626 = vmatpush.msra.mxu1 %v2600_v14 }
 0x46c   : > { %v2420_v7 = vmax.f32 %v2419_v63, 0.0 }
 0x46d   : > { %2627 = vmatpush.msra.mxu1 %v2599_v20 }
 0x46e   : > { %3140 = vmatmul.msk.f32.vlgmr.msrb.gmra.mxu1 %vm2444_vm15, %v2420_v7  ;;  %v2443_v28 = vrot.slane %v2420_v7, 1  ;;  %v2500_v48 = vrot.slane %v2420_v7, 2  ;;  %v2535_v8 = vrot.slane %v2420_v7, 3  ;;  %v2570_v31 = vrot.slane %v2420_v7, 4 }
 0x46f   : > { %2628 = vmatpush.msra.mxu1 %v2598_v42 }
 0x470   : > { %3139 = vmatmul.msk.f32.vlgmr.msrb.gmra.mxu0 %vm2444_vm15, %v2443_v28  ;;  %3151 = vmatmul.msk.f32.vlgmr.msra.gmra.mxu2 %vm2444_vm15, %v2500_v48 }
 0x471   : > { %3162 = vmatmul.msk.f32.vlgmr.msra.gmra.mxu3 %vm2444_vm15, %v2535_v8  ;;  %2629 = vmatpush.msra.mxu1 %v2597_v1 }
 0x478   : > { %3173 = vmatmul.msk.f32.vlgmr.msra.gmra.mxu0 %vm2444_vm15, %v2570_v31 }
 0x4eb   : > { %v2486_v23 = vpop.f32.mrf.mxu1 }
 0x4ed   : > { %v2464_v5 = vpop.f32.mrf.mxu0 }
 0x4ee   : > { %v2487_v43 = vadd.f32 %v2486_v23, %v2464_v5 }
 0x4f3   : > { %v2520_v52 = vpop.f32.mrf.mxu2 }
 0x4f4   : > { %v2523_v38 = vadd.f32 %v2520_v52, %v2487_v43  ;;  %v2555_v18 = vpop.f32.mrf.mxu3 }
 0x4f5   : > { %v2590_v35 = vpop.f32.mrf.mxu0 }
 0x4f6   : > { %v2558_v53 = vadd.f32 %v2555_v18, %v2523_v38 }
 0x4f8   : > { %v2593_v51 = vadd.f32 %v2590_v35, %v2558_v53 }
 0x4fa   : > { %v2595_v60 = vadd.f32 %v2594_v41, %v2593_v51 }
 0x4fc   : > { %v2596_v33 = vmax.f32 %v2595_v60, 0.0 }
 0x4fe   : > { %2630 = vmatmul.f32.vlgmr.msra.gmra.mxu1 %v2596_v33 }
 0x57b   : > { %v2631_v16 = vpop.f32.mrf.mxu1 }
 0x57c   : > { %v2632_v21 = vadd.f32 %v2631_v16, %v2613_v24 }
 0x57e   : > { %v2634_v61 = vmax.f32 %v2632_v21, 0.0 }
 0x580   : > { %2668 = vmatmul.f32.vlgmr.msrb.gmra.mxu2 %v2634_v61 }
 0x603   : > { %v2669_v44 = vpop.f32.mrf.mxu2 }
 0x604   : > { %v2670_v45 = vadd.f32 %v2669_v44, %v2651_v25 }
 0x606   : > { %2673 = vst.msk [vmem:[%s378_s24] sm:$0x1] %vm2672_vm0, %v2670_v45 }
 0x607   : > { %3248 = shalt.err (!%p3245_p3)
}
 0x608   : > { %3177 = dma.vmem_to_hbm [thread:$0]  (%p3386_p5), %s2686_s16, 16, %s2688_s30, %s2675_s22  }
 0x609 PF: > { %p3183_p4 = scmp.ge.s32.totalorder %s3283_s20, 2  ;;  %s2699_s26 = sand.u32 1, %s3271_s17  }
 0x60a   : > { %s2700_s15 = scalar_lea.sflag [#allocation3], %s2699_s26 }
 0x60b   : > { %p3180_p7 = pnand %p3183_p4, %p3390_p6 }
 0x60d   : > { %p3181_p8 = pneg %p3180_p7 }
 0x60f   : > { %3266 = dma.done.wait (%p3181_p8), %s2700_s15, 16  }
 0x610   : > { %3268 = vsyncadd (%p3181_p8), %s2700_s15, 4294967280  ;;  %s4896_s0 = sld [smem:[#allocation5_spill]]  ;;  %p21_p9 = scmp.ge.s32.totalorder %s3373_s23, 4  }
 0x611   : > { %s4897_s17 = smov %s3275_s18  ;;  %s4898_s18 = smov %s3279_s19 }
 0x612   : > { %s4900_s20 = smov %s3373_s23  ;;  %23 = sbr.rel (!%p21_p9) target bundleno = 5 (0x5), region = 123 }
 0x616   : > { %s4899_s19 = smov %s4896_s0 }
 0x617   :  { %2705 = vsyncpa [#allocation3], 1 }
 0x618   :  { %2707 = vsyncpa [#allocation3 + $0x1], 1 }

</bundles_post_ra>
